<compile_context>
chip_gen: v7x
topology: tpu7x:2x2x1
jax: 0.10.0
libtpu: 0.0.40
codegen_flags: <defaults>
</compile_context>

<pallas_src>
import jax
import jax.numpy as jnp
from jax import lax
from jax.experimental import pallas as pl
from jax.experimental.pallas import tpu as pltpu


def _linear_kernel(x_ref, w_ref, o_ref):
    # x_ref: [tm, K], w_ref: [tn, K] (PyTorch layout), o_ref: [tm, tn]
    # Contract the last (K) dim of both operands: out = x @ w.T on the MXU,
    # accumulating in f32 regardless of the streamed operand dtype.
    o_ref[...] = lax.dot_general(
        x_ref[...],
        w_ref[...],
        dimension_numbers=(((1,), (1,)), ((), ())),
        preferred_element_type=jnp.float32,
    ).astype(o_ref.dtype)


def _pick_tile(full, max_tile, align):
    """Largest tile <= max_tile that is a multiple of `align` and divides `full`.

    If the whole dim fits under max_tile, use it as a single full-extent block
    (always legal regardless of alignment)."""
    if full <= max_tile:
        return full
    t = (min(max_tile, full) // align) * align
    while t > align and full % t != 0:
        t -= align
    assert t >= align and full % t == 0, (
        f"dimension {full} is not tileable with alignment {align}"
    )
    return t


def trans_network_forward(x, w, *, max_tm=128, max_tn=256, compute_dtype=None):
    """out = x @ w.T  (bias-free Linear, PyTorch weight layout).

    x: [B, K]   (K = 4096 for this module)
    w: [N, K]
    compute_dtype: optional streaming dtype (e.g. jnp.bfloat16) for x and w;
                   accumulation stays f32, output keeps x's original dtype.
    returns [B, N]
    """
    out_dtype = x.dtype
    if compute_dtype is not None:
        x = x.astype(compute_dtype)
        w = w.astype(compute_dtype)

    B, K = x.shape
    N, K2 = w.shape
    assert K == K2, f"K mismatch: {K} vs {K2}"

    # Row (M) tile.  K is never split: a full-K f32 row tile is only 16 KiB
    # per 8 rows, so no reduction axis is needed.
    tm = _pick_tile(B, max_tm, 8)

    # Column (N) tile: lane-dense (multiple of 128).  Cap at ~N//2 when N
    # allows so the grid has at least 2 steps on a parallel axis: v7x shards
    # them across its two TensorCores, and on every chip the DMA of tile j+1
    # overlaps compute/writeback of tile j.
    tn_cap = max_tn
    if N >= 2 * 128:
        tn_cap = min(max_tn, max(128, N // 2))
    tn = _pick_tile(N, tn_cap, 128)

    nj = N // tn   # outer grid axis: weight tiles, fetched exactly once each
    ni = B // tm   # inner grid axis: row tiles

    grid = (nj, ni)  # (2, 1) for the reference B=8, N=256 problem.

    x_item = jnp.dtype(x.dtype).itemsize
    w_item = jnp.dtype(w.dtype).itemsize
    o_item = jnp.dtype(out_dtype).itemsize
    cost = pl.CostEstimate(
        flops=2 * B * K * N,
        transcendentals=0,
        # N-outer order: w streamed once; x re-streamed per weight tile
        # (x bytes are tiny relative to w bytes).
        bytes_accessed=N * K * w_item + nj * B * K * x_item + B * N * o_item,
    )

    return pl.pallas_call(
        _linear_kernel,
        out_shape=jax.ShapeDtypeStruct((B, N), out_dtype),
        grid_spec=pltpu.PrefetchScalarGridSpec(
            num_scalar_prefetch=0,
            grid=grid,
            in_specs=[
                # x rows, full K; depends only on the inner (M) axis, so it is
                # not re-DMA'd across consecutive iterations with the same i.
                pl.BlockSpec((tm, K), lambda j, i: (i, 0)),
                # w rows (PyTorch [N, K] layout), full K; depends only on the
                # outer (N) axis, so each weight tile is fetched exactly once.
                pl.BlockSpec((tn, K), lambda j, i: (j, 0)),
            ],
            out_specs=pl.BlockSpec((tm, tn), lambda j, i: (i, j)),
        ),
        compiler_params=pltpu.CompilerParams(
            dimension_semantics=("parallel", "parallel"),
        ),
        cost_estimate=cost,
    )(x, w)


if __name__ == "__main__":
    key = jax.random.PRNGKey(0)
    kx, kw = jax.random.split(key)

    B = 8               # small batch
    K = 4096            # fixed by the module (nn.Linear(4096, num_features))
    num_features = 256  # small num_features

    x = jax.random.normal(kx, (B, K), dtype=jnp.float32)
    # Deterministic synthetic weight, PyTorch layout [num_features, 4096]
    # (Kaiming-uniform-ish scale: 1/sqrt(fan_in)).
    w = jax.random.uniform(
        kw, (num_features, K), dtype=jnp.float32, minval=-1.0, maxval=1.0
    ) / jnp.sqrt(jnp.float32(K))

    ref = x @ w.T

    # f32 path: exact (f32 MXU + f32 accumulation).
    out = jax.block_until_ready(trans_network_forward(x, w))
    assert out.shape == (B, num_features)
    assert jnp.allclose(out, ref, atol=1e-4, rtol=1e-4)

    # bf16-streamed path: halves HBM bytes for this bandwidth-bound kernel;
    # f32 accumulation, so only input-quantization error remains.
    out_bf16 = jax.block_until_ready(
        trans_network_forward(x, w, compute_dtype=jnp.bfloat16)
    )
    assert out_bf16.shape == (B, num_features)
    assert out_bf16.dtype == out.dtype
    assert jnp.allclose(out_bf16, ref, atol=0.1, rtol=0.05)

    print("KERNEL_OK")
</pallas_src>

<mosaic_0001>
module attributes {stable_mosaic.version = 11 : i64} {
  func.func @_linear_kernel(%arg0: i32, %arg1: i32, %arg2: memref<8x4096xf32, #tpu.memory_space<vmem>>, %arg3: memref<128x4096xf32, #tpu.memory_space<vmem>>, %arg4: memref<8x128xf32, #tpu.memory_space<vmem>>) attributes {dimension_semantics = [#tpu.dimension_semantics<parallel>, #tpu.dimension_semantics<parallel>], iteration_bounds = array<i64: 2, 1>, scalar_prefetch = 0 : i64, scratch_operands = 0 : i64, tpu.core_type = #tpu.core_type<tc>, window_params = [{transform_indices = @transform_0, window_bounds = array<i64: 8, 4096>}, {transform_indices = @transform_1, window_bounds = array<i64: 128, 4096>}, {transform_indices = @transform_2, window_bounds = array<i64: 8, 128>}]} {
    %c0 = arith.constant 0 : index
    %c0_0 = arith.constant 0 : index
    %0 = vector.load %arg2[%c0, %c0_0] : memref<8x4096xf32, #tpu.memory_space<vmem>>, vector<8x4096xf32>
    %c0_1 = arith.constant 0 : index
    %c0_2 = arith.constant 0 : index
    %1 = vector.load %arg3[%c0_1, %c0_2] : memref<128x4096xf32, #tpu.memory_space<vmem>>, vector<128x4096xf32>
    %cst = arith.constant dense<0.000000e+00> : vector<8x128xf32>
    %2 = tpu.matmul %0, %1, %cst {dimension_numbers = #tpu.dot_dimension_numbers<[1], [1], [0], [0], [0, 0, 1, 0], [], []>} : vector<8x4096xf32>, vector<128x4096xf32>, vector<8x128xf32> -> vector<8x128xf32>
    %c0_3 = arith.constant 0 : index
    %c0_4 = arith.constant 0 : index
    %3 = vector.load %arg4[%c0_3, %c0_4] : memref<8x128xf32, #tpu.memory_space<vmem>>, vector<8x128xf32>
    tpu.vector_store %arg4[%c0_3, %c0_4], %2 {strides = array<i32>} : memref<8x128xf32, #tpu.memory_space<vmem>>, vector<8x128xf32>,
    return
  }
  func.func @transform_0(%arg0: i32, %arg1: i32) -> (i32, i32) {
    %c0_i32 = arith.constant 0 : i32
    %c0_i32_0 = arith.constant 0 : i32
    return %arg1, %c0_i32 : i32, i32
  }
  func.func @transform_1(%arg0: i32, %arg1: i32) -> (i32, i32) {
    %c0_i32 = arith.constant 0 : i32
    %c0_i32_0 = arith.constant 0 : i32
    return %arg0, %c0_i32 : i32, i32
  }
  func.func @transform_2(%arg0: i32, %arg1: i32) -> (i32, i32) {
    %c0_i32 = arith.constant 0 : i32
    return %arg1, %arg0 : i32, i32
  }
}

</mosaic_0001>

<bundles_post_ra>
// kernel: tpu_custom_call.1
= control target key start
LH: loop header
LB: loop body
LE: loop exit
PB: predicated region body
PF: predicated region fallthrough
CT: control target
= control target key end

     0   :  { %7 = vsyncpa [#allocation3], 0  ;;  %s3509_s0 = inlined_call_operand.hbm [shape: f32[8,4096], index: 0, kind: input, shape index: {}]   ;;  %s3510_s1 = inlined_call_operand.hbm [shape: f32[256,4096], index: 1, kind: input, shape index: {}]   ;;  %s3511_s2 = inlined_call_operand.hbm [shape: f32[8,256], index: 2, kind: output, shape index: {}]  }
   0x1   :  { %8 = vsyncpa [#allocation6], 0 }
   0x2   :  { %10 = vsyncpa [#allocation6 + $0x1], 0 }
   0x3   :  { %11 = vsyncpa [#allocation4], 0 }
   0x4   :  { %13 = vsyncpa [#allocation4 + $0x1], 0  ;;  %s2775_s9 = smov 0   ;;  %s2777_s10 = smov 0  }
   0x5   :  { %s2779_s11 = smov 0   ;;  %s2781_s12 = smov 0  }
   0x6   :  { %s2783_s13 = smov 0   ;;  %s2785_s14 = smov 0  }
   0x7 LB: > { %s1974_s15 = sadd.s32 4294967295, %s2753_s14   ;;  %s1975_s16 = sadd.s32 4294967294, %s2753_s14   ;;  %s2753_s14 = sphi %s2785_s14, %s19_s14   ;;  %s2749_s13 = sphi %s2783_s13, %s3539_s13   ;;  %s2745_s12 = sphi %s2781_s12, %s3538_s12   ;;  %s2741_s11 = sphi %s2779_s11, %s3537_s11   ;;  %s2737_s10 = sphi %s2777_s10, %s3536_s10   ;;  %s2733_s9 = sphi %s2775_s9, %s3535_s9  }
   0x8   : > { %s64_s17 = sadd.s32 1, %s2741_s11  ;;  %p71_p0 = scmp.ne.s32.totalorder %s2741_s11, %s2737_s10 }
   0x9   : > { %p72_p1 = scmp.eq.s32.totalorder %s2753_s14, 0  ;;  %p77_p2 = scmp.ne.s32.totalorder %s2737_s10, %s2733_s9 }
   0xa   : > { %p2813_p3 = scmp.eq.s32.totalorder %s1974_s15, 0  ;;  %p103_p4 = scmp.eq.s32.totalorder %s1974_s15, 1 }
   0xb   : > { %p2817_p5 = por %p72_p1, %p71_p0  ;;  %p109_p6 = scmp.eq.s32.totalorder %s1975_s16, 1 }
   0xc   : > { %s3518_s18 = scalar_select %p2813_p3, 1, 0 }
   0xd   : > { %p2823_p7 = por %p2813_p3, %p77_p2  ;;  %p2827_p8 = por %p103_p4, %p71_p0 }
   0xe   : > { %p2831_p9 = por %p109_p6, %p77_p2  ;;  %p1976_p10 = scmp.ge.s32.totalorder %s2753_s14, 1 }
   0xf   : > { %s3520_s20 = scalar_select %p2823_p7, 1, 0 }
  0x10   : > { %s3521_s21 = scalar_select %p2827_p8, 1, 0 }
  0x11   : > { %s3522_s22 = scalar_select %p2831_p9, 1, 0 }
  0x12   : > { %p116_p11 = scmp.lt.s32.totalorder %s2753_s14, 3  ;;  %s2755_s24 = smov [#allocation2]  }
  0x13   : > { %s132_s25 = sshll.u32 %s2755_s24, 4  ;;  %p2555_p1 = scmp.lt.s32.totalorder %s2753_s14, 2  ;;  %s133_s25 = int_to_ptr.vmem [resolvable:$true] %s132_s25 }
  0x14   : > { %p2838_p13 = pnand %p1976_p10, %p116_p11  ;;  %s31_s28 = sadd.s32 1, %s2749_s13 }
  0x15   : > { %p2847_p4 = pnand %p2555_p1, %p2817_p5  ;;  %p2858_p6 = scmp.ge.s32.totalorder %s31_s28, 2 }
  0x16   : > { %s3523_s23 = scalar_select %p2838_p13, 1, 0 }
  0x17   : > { %p2542_p0 = pneg %p2838_p13  ;;  %s143_s30 = sand.u32 1, %s2741_s11  }
  0x18   : > { %s3524_s26 = scalar_select %p2847_p4, 1, 0 }
  0x19   : > { %p2853_p2 = pnand %p2542_p0, %p2813_p3  ;;  %s2609_s5 = scalar_lea.hbm %s3509_s0, 4096 }
  0x1a   : > { %s3526_s29 = scalar_select %p2858_p6, 1, 0 }
  0x1b   : > { %p2610_p5 = scmp.ne.s32.totalorder %s3509_s0, %s2609_s5  ;;  %p2611_p10 = pneg %p2853_p2 }
  0x1c   : > { %p2616_p0 = scmp.lt.u32.totalorder %s2609_s5, %s3509_s0 }
  0x1d   : > { %p2612_p11 = pnand %p2611_p10, %p2610_p5 }
  0x1f   : > { %p2613_p1 = pneg %p2612_p11 }
  0x21   : > { %p2618_p12 = pnand %p2616_p0, %p2613_p1 }
  0x23   : > { %2621 = shalt.err (!%p2618_p12)
}
  0x24   : > { %s2622_s16 = scalar_lea.vmem %s133_s25, 4096  ;;  %p2630_p3 = scmp.lt.s32.totalorder %s133_s25, %s133_s25 }
  0x25   : > { %p2623_p9 = scmp.ne.s32.totalorder %s133_s25, %s2622_s16  ;;  %p2631_p13 = scmp.lt.s32.totalorder %s2622_s16, %s2622_s16 }
  0x27   : > { %p2625_p8 = pnand %p2623_p9, %p2611_p10  ;;  %p2632_p4 = por %p2631_p13, %p2630_p3 }
  0x29   : > { %p2626_p7 = pneg %p2625_p8 }
  0x2b   : > { %p2633_p6 = pnand %p2632_p4, %p2626_p7 }
  0x2d   : > { %2636 = shalt.err (!%p2633_p6)
}
  0x2e   : > { %2545 = dma.hbm_to_vmem [thread:$0]  (!%p2853_p2), %s3509_s0, 4096, %s133_s25, [#allocation3]  }
  0x2f   : > { %p3527_p9 = scmp.ne.s32.totalorder %s3526_s29, 0  ;;  %s1979_s3 = sshll.u32 %s143_s30, 12 }
  0x30   : > { %s1992_s5 = sshll.u32 %s2749_s13, 16  ;;  %s147_s8 = scalar_lea.vmem [#allocation5], %s1979_s3 }
  0x31   : > { %s3541_s28 = smov (%p3527_p9, %s31_s28), 0  ;;  %s2889_s7 = scalar_lea.hbm %s3510_s1, %s1992_s5 }
  0x32   : > { %s61_s4 = ssub.s32 %s2749_s13, %s3541_s28  ;;  %s155_s15 = sshll.u32 %s147_s8, 4  ;;  %s2896_s15 = int_to_ptr.vmem [resolvable:$true] %s155_s15 }
  0x33   : > { %p62_p3 = scmp.eq.s32.totalorder %s61_s4, 0  ;;  %s2898_s29 = scalar_lea.sflag [#allocation6], %s143_s30 }
  0x34   : > { %s2637_s16 = scalar_lea.hbm %s2889_s7, 65536  ;;  %p3528_p8 = scmp.ne.s32.totalorder %s3524_s26, 0 }
  0x35   : > { %s2894_s25 = scalar_select %p62_p3, %s2741_s11, %s64_s17  }
  0x36   : > { %p2638_p7 = scmp.ne.s32.totalorder %s2889_s7, %s2637_s16  ;;  %p2639_p12 = pneg %p3528_p8 }
  0x37   : > { %s2642_s3 = scalar_lea.hbm %s3510_s1, 131072  ;;  %p2643_p2 = scmp.lt.u32.totalorder %s2889_s7, %s3510_s1 }
  0x38   : > { %p2640_p13 = pnand %p2639_p12, %p2638_p7  ;;  %p2644_p6 = scmp.lt.u32.totalorder %s2642_s3, %s2637_s16 }
  0x39   : > { %p2646_p10 = scmp.lt.u32.totalorder %s2637_s16, %s2889_s7 }
  0x3a   : > { %p2641_p4 = pneg %p2640_p13  ;;  %p2645_p5 = por %p2644_p6, %p2643_p2 }
  0x3c   : > { %p2647_p11 = por %p2646_p10, %p2645_p5 }
  0x3e   : > { %p2648_p1 = pnand %p2647_p11, %p2641_p4 }
  0x40   : > { %2651 = shalt.err (!%p2648_p1)
}
  0x41   : > { %s2652_s17 = scalar_lea.vmem %s2896_s15, 65536  ;;  %s2756_s30 = smov [#allocation5]  }
  0x42   : > { %p2653_p0 = scmp.ne.s32.totalorder %s2896_s15, %s2652_s17  ;;  %s2657_s27 = sshll.u32 %s2756_s30, 4  ;;  %s2658_s27 = int_to_ptr.vmem [resolvable:$false] %s2657_s27 }
  0x43   : > { %s2659_s6 = scalar_lea.vmem %s2658_s27, 131072  ;;  %p2660_p7 = scmp.lt.s32.totalorder %s2896_s15, %s2658_s27 }
  0x44   : > { %p2655_p9 = pnand %p2653_p0, %p2639_p12  ;;  %p2661_p13 = scmp.lt.s32.totalorder %s2659_s6, %s2652_s17 }
  0x46   : > { %p2656_p3 = pneg %p2655_p9  ;;  %p2662_p2 = por %p2661_p13, %p2660_p7 }
  0x48   : > { %p2663_p6 = pnand %p2662_p2, %p2656_p3 }
  0x4a   : > { %2666 = shalt.err (!%p2663_p6)
}
  0x4b   : > { %s2757_s8 = smov 4096   ;;  %s2758_s16 = smov 256  }
  0x4c   : > { %2549 = dma.hbm_to_vmem [thread:$0]  (!%p3528_p8), %s2889_s7, 65536, %s2896_s15, %s2898_s29, %s2757_s8, %s2757_s8, %s2758_s16  }
  0x4d   : > { %p3529_p12 = scmp.ne.s32.totalorder %s3523_s23, 0 }
  0x4e   : > { %p3530_p4 = scmp.ne.s32.totalorder (!%p3529_p12), %s3518_s18, 0 }
  0x4f   : > { %167 = sbr.rel (%p3529_p12) target bundleno = 837 (0x345), region = 28 }
  0x56   : > { %2720 = dma.done.wait (%p3530_p4), [#allocation3], 4096  }
  0x57   : > { %2722 = vsyncadd (%p3530_p4), [#allocation3], 4294963200  ;;  %s2933_s19 = sand.u32 1, %s2737_s10   ;;  %p3531_p8 = scmp.ne.s32.totalorder %s3520_s20, 0 }
  0x58   : > { %s1985_s24 = sshll.u32 %s2933_s19, 12  ;;  %s174_s3 = scalar_lea.sflag [#allocation6], %s2933_s19 }
  0x59   : > { %s2937_s4 = scalar_lea.vmem [#allocation5], %s1985_s24 }
  0x5a   : > { %2724 = dma.done.wait (%p3531_p8), %s174_s3, 65536  }
  0x5b   : > { %2726 = vsyncadd (%p3531_p8), %s174_s3, 4294901760  ;;  %v232_v0 = vld [vmem:[%s2937_s4 + $0x8] sm:$0xff]  ;;  %v231_v5 = vld [vmem:[%s2937_s4] sm:$0xff]  ;;  %s1986_s18 = sshll.u32 %s2933_s19, 3  ;;  %s1988_s20 = sshll.u32 %s2745_s12, 7 }
  0x5c   : > { %v264_v1 = vld [vmem:[%s2937_s4 + $0x108] sm:$0xff]  ;;  %v263_v6 = vld [vmem:[%s2937_s4 + $0x100] sm:$0xff]  ;;  %s197_s23 = scalar_lea.vmem [#allocation7], %s1986_s18  ;;  %s3460_s29 = scalar_lea.hbm %s3511_s2, %s1988_s20 }
  0x5d   : > { %v248_v2 = vld [vmem:[%s2937_s4 + $0x88] sm:$0xff]  ;;  %v1993_v3 = vpack.c.bf16 %v264_v1, %v232_v0  ;;  %v1995_v8 = vpack.c.bf16 %v263_v6, %v231_v5  ;;  %v247_v9 = vld [vmem:[%s2937_s4 + $0x80] sm:$0xff]  ;;  %s1880_s26 = sshll.u32 %s197_s23, 4  ;;  %s1865_s5 = scalar_lea.sflag [#allocation4], %s2933_s19  ;;  %s3462_s26 = int_to_ptr.vmem [resolvable:$true] %s1880_s26 }
  0x5e   : > { %v280_v4 = vld [vmem:[%s2937_s4 + $0x188] sm:$0xff]  ;;  %v279_v10 = vld [vmem:[%s2937_s4 + $0x180] sm:$0xff]  ;;  %s2667_s12 = scalar_lea.vmem %s3462_s26, 128  ;;  %p3532_p10 = scmp.ne.s32.totalorder %s3521_s21, 0 }
  0x5f   : > { %v2249_v7 = vpack.c.bf16 %v280_v4, %v248_v2  ;;  %v296_v11 = vld [vmem:[%s2937_s4 + $0x208] sm:$0xff]  ;;  %1994 = vmatprep.subr.bf16.mxu1 %v1993_v3  ;;  %v2251_v12 = vpack.c.bf16 %v279_v10, %v247_v9  ;;  %v295_v18 = vld [vmem:[%s2937_s4 + $0x200] sm:$0xff]  ;;  %p2668_p5 = scmp.ne.s32.totalorder %s3462_s26, %s2667_s12  ;;  %s2759_s17 = smov [#allocation7]  }
  0x60   : > { %v328_v13 = vld [vmem:[%s2937_s4 + $0x308] sm:$0xff]  ;;  %1996 = vmatpush1.bf16.xpose.msra.mxu1 %v1995_v8  ;;  %v327_v19 = vld [vmem:[%s2937_s4 + $0x300] sm:$0xff]  ;;  %s2671_s30 = sshll.u32 %s2759_s17, 4  ;;  %s2672_s30 = int_to_ptr.vmem [resolvable:$false] %s2671_s30 }
  0x61   : > { %v312_v14 = vld [vmem:[%s2937_s4 + $0x288] sm:$0xff]  ;;  %2250 = vmatprep.subr.bf16.mxu0 %v2249_v7  ;;  %v1997_v16 = vpack.c.bf16 %v328_v13, %v296_v11  ;;  %v311_v20 = vld [vmem:[%s2937_s4 + $0x280] sm:$0xff]  ;;  %v1999_v26 = vpack.c.bf16 %v327_v19, %v295_v18  ;;  %p2669_p11 = pnand %p2668_p5, %p3532_p10  ;;  %s2673_s27 = scalar_lea.vmem %s2672_s30, 256 }
  0x62   : > { %v344_v15 = vld [vmem:[%s2937_s4 + $0x388] sm:$0xff]  ;;  %2252 = vmatpush1.bf16.xpose.msra.mxu0 %v2251_v12  ;;  %v343_v21 = vld [vmem:[%s2937_s4 + $0x380] sm:$0xff]  ;;  %p2674_p0 = scmp.lt.s32.totalorder %s3462_s26, %s2672_s30  ;;  %p2675_p9 = scmp.lt.s32.totalorder %s2673_s27, %s2667_s12 }
  0x63   : > { %v2253_v17 = vpack.c.bf16 %v344_v15, %v312_v14  ;;  %1998 = vmatprep.subr.bf16.mxu1 %v1997_v16  ;;  %v360_v22 = vld [vmem:[%s2937_s4 + $0x408] sm:$0xff]  ;;  %v2255_v27 = vpack.c.bf16 %v343_v21, %v311_v20  ;;  %v359_v30 = vld [vmem:[%s2937_s4 + $0x400] sm:$0xff]  ;;  %p2670_p1 = pneg %p2669_p11 }
  0x64   : > { %v392_v23 = vld [vmem:[%s2937_s4 + $0x508] sm:$0xff]  ;;  %v391_v31 = vld [vmem:[%s2937_s4 + $0x500] sm:$0xff]  ;;  %p2676_p3 = por %p2675_p9, %p2674_p0 }
  0x65   : > { %2254 = vmatprep.subr.bf16.mxu0 %v2253_v17  ;;  %v376_v24 = vld [vmem:[%s2937_s4 + $0x488] sm:$0xff]  ;;  %v2001_v28 = vpack.c.bf16 %v392_v23, %v360_v22  ;;  %v375_v32 = vld [vmem:[%s2937_s4 + $0x480] sm:$0xff]  ;;  %v2003_v38 = vpack.c.bf16 %v391_v31, %v359_v30 }
  0x66   : > { %v408_v25 = vld [vmem:[%s2937_s4 + $0x588] sm:$0xff]  ;;  %v407_v33 = vld [vmem:[%s2937_s4 + $0x580] sm:$0xff]  ;;  %p2677_p7 = pnand %p2676_p3, %p2670_p1 }
  0x67   : > { %v2257_v29 = vpack.c.bf16 %v408_v25, %v376_v24  ;;  %v424_v34 = vld [vmem:[%s2937_s4 + $0x608] sm:$0xff]  ;;  %v2259_v39 = vpack.c.bf16 %v407_v33, %v375_v32  ;;  %v423_v42 = vld [vmem:[%s2937_s4 + $0x600] sm:$0xff]  ;;  %v234_v32 = vld [vmem:[%s2937_s4 + $0x18] sm:$0xff] }
  0x68   : > { %2000 = vmatpush1.bf16.xpose.msra.mxu1 %v1999_v26  ;;  %v456_v35 = vld [vmem:[%s2937_s4 + $0x708] sm:$0xff]  ;;  %v455_v43 = vld [vmem:[%s2937_s4 + $0x700] sm:$0xff]  ;;  %v266_v33 = vld [vmem:[%s2937_s4 + $0x118] sm:$0xff] }
  0x69   : > { %2002 = vmatprep.subr.bf16.mxu1 %v2001_v28  ;;  %v440_v36 = vld [vmem:[%s2937_s4 + $0x688] sm:$0xff]  ;;  %v2005_v40 = vpack.c.bf16 %v456_v35, %v424_v34  ;;  %v439_v44 = vld [vmem:[%s2937_s4 + $0x680] sm:$0xff]  ;;  %v2007_v52 = vpack.c.bf16 %v455_v43, %v423_v42  ;;  %v250_v34 = vld [vmem:[%s2937_s4 + $0x98] sm:$0xff] }
  0x6a   : > { %2256 = vmatpush1.bf16.xpose.msra.mxu0 %v2255_v27  ;;  %v472_v37 = vld [vmem:[%s2937_s4 + $0x788] sm:$0xff]  ;;  %v471_v45 = vld [vmem:[%s2937_s4 + $0x780] sm:$0xff]  ;;  %v282_v35 = vld [vmem:[%s2937_s4 + $0x198] sm:$0xff] }
  0x6b   : > { %2258 = vmatprep.subr.bf16.mxu0 %v2257_v29  ;;  %v2261_v41 = vpack.c.bf16 %v472_v37, %v440_v36  ;;  %v200_v46 = vld [vmem:[#allocation2 + $0x8] sm:$0xff]  ;;  %v2263_v53 = vpack.c.bf16 %v471_v45, %v439_v44  ;;  %v487_v56 = vld [vmem:[%s2937_s4 + $0x800] sm:$0xff]  ;;  %v249_v42 = vld [vmem:[%s2937_s4 + $0x90] sm:$0xff] }
  0x6c   : > { %v488_v47 = vld [vmem:[%s2937_s4 + $0x808] sm:$0xff]  ;;  %807 = vmatprep.mubr.f32.mxu1 %v200_v46  ;;  %v519_v57 = vld [vmem:[%s2937_s4 + $0x900] sm:$0xff]  ;;  %v281_v43 = vld [vmem:[%s2937_s4 + $0x190] sm:$0xff] }
  0x6d   : > { %v520_v48 = vld [vmem:[%s2937_s4 + $0x908] sm:$0xff]  ;;  %v503_v58 = vld [vmem:[%s2937_s4 + $0x880] sm:$0xff]  ;;  %v2011_v0 = vpack.c.bf16 %v519_v57, %v487_v56  ;;  %v298_v44 = vld [vmem:[%s2937_s4 + $0x218] sm:$0xff] }
  0x6e   : > { %v216_v49 = vld [vmem:[#allocation2 + $0x88] sm:$0xff]  ;;  %v2009_v54 = vpack.c.bf16 %v520_v48, %v488_v47  ;;  %v535_v59 = vld [vmem:[%s2937_s4 + $0x980] sm:$0xff]  ;;  %v330_v45 = vld [vmem:[%s2937_s4 + $0x318] sm:$0xff] }
  0x6f   : > { %v504_v50 = vld [vmem:[%s2937_s4 + $0x888] sm:$0xff]  ;;  %1367 = vmatprep.mubr.f32.mxu0 %v216_v49  ;;  %v2267_v1 = vpack.c.bf16 %v535_v59, %v503_v58  ;;  %v551_v4 = vld [vmem:[%s2937_s4 + $0xa00] sm:$0xff]  ;;  %v314_v46 = vld [vmem:[%s2937_s4 + $0x298] sm:$0xff] }
  0x70   : > { %2004 = vmatpush1.bf16.xpose.msra.mxu1 %v2003_v38  ;;  %v536_v51 = vld [vmem:[%s2937_s4 + $0x988] sm:$0xff]  ;;  %v583_v5 = vld [vmem:[%s2937_s4 + $0xb00] sm:$0xff]  ;;  %v2025_v38 = vpack.c.bf16 %v266_v33, %v234_v32  ;;  %v346_v47 = vld [vmem:[%s2937_s4 + $0x398] sm:$0xff] }
  0x71   : > { %2006 = vmatprep.subr.bf16.mxu1 %v2005_v40  ;;  %v2265_v55 = vpack.c.bf16 %v536_v51, %v504_v50  ;;  %v552_v60 = vld [vmem:[%s2937_s4 + $0xa08] sm:$0xff]  ;;  %v567_v6 = vld [vmem:[%s2937_s4 + $0xa80] sm:$0xff]  ;;  %v2015_v12 = vpack.c.bf16 %v583_v5, %v551_v4  ;;  %v233_v40 = vld [vmem:[%s2937_s4 + $0x10] sm:$0xff]  ;;  %v2283_v51 = vpack.c.bf16 %v281_v43, %v249_v42 }
  0x72   : > { %2260 = vmatpush1.bf16.xpose.msra.mxu0 %v2259_v39  ;;  %v584_v61 = vld [vmem:[%s2937_s4 + $0xb08] sm:$0xff]  ;;  %v599_v7 = vld [vmem:[%s2937_s4 + $0xb80] sm:$0xff]  ;;  %v2281_v39 = vpack.c.bf16 %v282_v35, %v250_v34  ;;  %v297_v56 = vld [vmem:[%s2937_s4 + $0x210] sm:$0xff] }
  0x73   : > { %2262 = vmatprep.subr.bf16.mxu0 %v2261_v41  ;;  %v568_v62 = vld [vmem:[%s2937_s4 + $0xa88] sm:$0xff]  ;;  %v2013_v2 = vpack.c.bf16 %v584_v61, %v552_v60  ;;  %v2271_v13 = vpack.c.bf16 %v599_v7, %v567_v6  ;;  %v615_v16 = vld [vmem:[%s2937_s4 + $0xc00] sm:$0xff]  ;;  %v265_v41 = vld [vmem:[%s2937_s4 + $0x110] sm:$0xff] }
  0x74   : > { %v600_v63 = vld [vmem:[%s2937_s4 + $0xb88] sm:$0xff]  ;;  %v647_v17 = vld [vmem:[%s2937_s4 + $0xd00] sm:$0xff]  ;;  %v2027_v49 = vpack.c.bf16 %v265_v41, %v233_v40  ;;  %v329_v57 = vld [vmem:[%s2937_s4 + $0x310] sm:$0xff] }
  0x75   : > { %v2269_v3 = vpack.c.bf16 %v600_v63, %v568_v62  ;;  %v616_v8 = vld [vmem:[%s2937_s4 + $0xc08] sm:$0xff]  ;;  %v631_v18 = vld [vmem:[%s2937_s4 + $0xc80] sm:$0xff]  ;;  %v2019_v24 = vpack.c.bf16 %v647_v17, %v615_v16  ;;  %v313_v58 = vld [vmem:[%s2937_s4 + $0x290] sm:$0xff] }
  0x76   : > { %v648_v9 = vld [vmem:[%s2937_s4 + $0xd08] sm:$0xff]  ;;  %v663_v19 = vld [vmem:[%s2937_s4 + $0xd80] sm:$0xff]  ;;  %v345_v59 = vld [vmem:[%s2937_s4 + $0x390] sm:$0xff] }
  0x77   : > { %v632_v10 = vld [vmem:[%s2937_s4 + $0xc88] sm:$0xff]  ;;  %v2017_v14 = vpack.c.bf16 %v648_v9, %v616_v8  ;;  %v2275_v25 = vpack.c.bf16 %v663_v19, %v631_v18  ;;  %v679_v28 = vld [vmem:[%s2937_s4 + $0xe00] sm:$0xff]  ;;  %v362_v60 = vld [vmem:[%s2937_s4 + $0x418] sm:$0xff] }
  0x78   : > { %2008 = vmatpush1.bf16.xpose.msra.mxu1 %v2007_v52  ;;  %v664_v11 = vld [vmem:[%s2937_s4 + $0xd88] sm:$0xff]  ;;  %v711_v29 = vld [vmem:[%s2937_s4 + $0xf00] sm:$0xff]  ;;  %v2029_v52 = vpack.c.bf16 %v330_v45, %v298_v44  ;;  %v394_v61 = vld [vmem:[%s2937_s4 + $0x518] sm:$0xff] }
  0x79   : > { %2010 = vmatprep.subr.bf16.mxu1 %v2009_v54  ;;  %v2273_v15 = vpack.c.bf16 %v664_v11, %v632_v10  ;;  %v680_v20 = vld [vmem:[%s2937_s4 + $0xe08] sm:$0xff]  ;;  %v695_v30 = vld [vmem:[%s2937_s4 + $0xe80] sm:$0xff]  ;;  %v2023_v36 = vpack.c.bf16 %v711_v29, %v679_v28  ;;  %v202_v54 = vld [vmem:[#allocation2 + $0x18] sm:$0xff] }
  0x7a   : > { %2264 = vmatpush1.bf16.xpose.msra.mxu0 %v2263_v53  ;;  %v712_v21 = vld [vmem:[%s2937_s4 + $0xf08] sm:$0xff]  ;;  %v727_v31 = vld [vmem:[%s2937_s4 + $0xf80] sm:$0xff]  ;;  %v2285_v53 = vpack.c.bf16 %v346_v47, %v314_v46  ;;  %v378_v62 = vld [vmem:[%s2937_s4 + $0x498] sm:$0xff] }
  0x7b   : > { %2266 = vmatprep.subr.bf16.mxu0 %v2265_v55  ;;  %v696_v22 = vld [vmem:[%s2937_s4 + $0xe88] sm:$0xff]  ;;  %v2021_v26 = vpack.c.bf16 %v712_v21, %v680_v20  ;;  %v2279_v37 = vpack.c.bf16 %v727_v31, %v695_v30  ;;  %v199_v48 = vld [vmem:[#allocation2] sm:$0xff]  ;;  %v218_v55 = vld [vmem:[#allocation2 + $0x98] sm:$0xff] }
  0x7c   : > { %v728_v23 = vld [vmem:[%s2937_s4 + $0xf88] sm:$0xff]  ;;  %v215_v50 = vld [vmem:[#allocation2 + $0x80] sm:$0xff]  ;;  %v410_v63 = vld [vmem:[%s2937_s4 + $0x598] sm:$0xff] }
  0x7d   : > { %v2277_v27 = vpack.c.bf16 %v728_v23, %v696_v22  ;;  %v361_v4 = vld [vmem:[%s2937_s4 + $0x410] sm:$0xff]  ;;  %v426_v8 = vld [vmem:[%s2937_s4 + $0x618] sm:$0xff] }
  0x7e   : > { %v393_v5 = vld [vmem:[%s2937_s4 + $0x510] sm:$0xff]  ;;  %v458_v9 = vld [vmem:[%s2937_s4 + $0x718] sm:$0xff] }
  0x7f   : > { %v377_v6 = vld [vmem:[%s2937_s4 + $0x490] sm:$0xff]  ;;  %v442_v10 = vld [vmem:[%s2937_s4 + $0x698] sm:$0xff] }
  0x80   : > { %2012 = vmatpush1.bf16.xpose.msra.mxu1 %v2011_v0  ;;  %v2031_v0 = vpack.c.bf16 %v329_v57, %v297_v56  ;;  %v409_v7 = vld [vmem:[%s2937_s4 + $0x590] sm:$0xff]  ;;  %v474_v11 = vld [vmem:[%s2937_s4 + $0x798] sm:$0xff] }
  0x81   : > { %2014 = vmatprep.subr.bf16.mxu1 %v2013_v2  ;;  %v2033_v2 = vpack.c.bf16 %v394_v61, %v362_v60  ;;  %v425_v16 = vld [vmem:[%s2937_s4 + $0x610] sm:$0xff]  ;;  %v490_v20 = vld [vmem:[%s2937_s4 + $0x818] sm:$0xff] }
  0x82   : > { %2268 = vmatpush1.bf16.xpose.msra.mxu0 %v2267_v1  ;;  %v2287_v1 = vpack.c.bf16 %v345_v59, %v313_v58  ;;  %v457_v17 = vld [vmem:[%s2937_s4 + $0x710] sm:$0xff]  ;;  %v522_v21 = vld [vmem:[%s2937_s4 + $0x918] sm:$0xff] }
  0x83   : > { %2270 = vmatprep.subr.bf16.mxu0 %v2269_v3  ;;  %v2289_v3 = vpack.c.bf16 %v410_v63, %v378_v62  ;;  %v441_v18 = vld [vmem:[%s2937_s4 + $0x690] sm:$0xff]  ;;  %v506_v22 = vld [vmem:[%s2937_s4 + $0x898] sm:$0xff] }
  0x84   : > { %v473_v19 = vld [vmem:[%s2937_s4 + $0x790] sm:$0xff]  ;;  %v538_v23 = vld [vmem:[%s2937_s4 + $0x998] sm:$0xff] }
  0x85   : > { %v489_v28 = vld [vmem:[%s2937_s4 + $0x810] sm:$0xff]  ;;  %v554_v32 = vld [vmem:[%s2937_s4 + $0xa18] sm:$0xff] }
  0x86   : > { %v521_v29 = vld [vmem:[%s2937_s4 + $0x910] sm:$0xff]  ;;  %v586_v33 = vld [vmem:[%s2937_s4 + $0xb18] sm:$0xff] }
  0x87   : > { %v505_v30 = vld [vmem:[%s2937_s4 + $0x890] sm:$0xff]  ;;  %v570_v34 = vld [vmem:[%s2937_s4 + $0xa98] sm:$0xff] }
  0x88   : > { %2016 = vmatpush1.bf16.xpose.msra.mxu1 %v2015_v12  ;;  %v2035_v12 = vpack.c.bf16 %v393_v5, %v361_v4  ;;  %v537_v31 = vld [vmem:[%s2937_s4 + $0x990] sm:$0xff]  ;;  %v602_v35 = vld [vmem:[%s2937_s4 + $0xb98] sm:$0xff]  ;;  %v236_v4 = vld [vmem:[%s2937_s4 + $0x28] sm:$0xff] }
  0x89   : > { %2018 = vmatprep.subr.bf16.mxu1 %v2017_v14  ;;  %v2037_v14 = vpack.c.bf16 %v458_v9, %v426_v8  ;;  %v553_v40 = vld [vmem:[%s2937_s4 + $0xa10] sm:$0xff]  ;;  %v618_v44 = vld [vmem:[%s2937_s4 + $0xc18] sm:$0xff]  ;;  %v268_v5 = vld [vmem:[%s2937_s4 + $0x128] sm:$0xff] }
  0x8a   : > { %2272 = vmatpush1.bf16.xpose.msra.mxu0 %v2271_v13  ;;  %v2291_v13 = vpack.c.bf16 %v409_v7, %v377_v6  ;;  %v585_v41 = vld [vmem:[%s2937_s4 + $0xb10] sm:$0xff]  ;;  %v650_v45 = vld [vmem:[%s2937_s4 + $0xd18] sm:$0xff]  ;;  %v252_v6 = vld [vmem:[%s2937_s4 + $0xa8] sm:$0xff] }
  0x8b   : > { %2274 = vmatprep.subr.bf16.mxu0 %v2273_v15  ;;  %v2293_v15 = vpack.c.bf16 %v474_v11, %v442_v10  ;;  %v569_v42 = vld [vmem:[%s2937_s4 + $0xa90] sm:$0xff]  ;;  %v634_v46 = vld [vmem:[%s2937_s4 + $0xc98] sm:$0xff]  ;;  %v284_v7 = vld [vmem:[%s2937_s4 + $0x1a8] sm:$0xff]  ;;  %v2057_v10 = vpack.c.bf16 %v268_v5, %v236_v4 }
  0x8c   : > { %v601_v43 = vld [vmem:[%s2937_s4 + $0xb90] sm:$0xff]  ;;  %v666_v47 = vld [vmem:[%s2937_s4 + $0xd98] sm:$0xff]  ;;  %v2313_v11 = vpack.c.bf16 %v284_v7, %v252_v6  ;;  %v556_v4 = vld [vmem:[%s2937_s4 + $0xa28] sm:$0xff] }
  0x8d   : > { %v682_v56 = vld [vmem:[%s2937_s4 + $0xe18] sm:$0xff]  ;;  %v588_v5 = vld [vmem:[%s2937_s4 + $0xb28] sm:$0xff] }
  0x8e   : > { %v714_v57 = vld [vmem:[%s2937_s4 + $0xf18] sm:$0xff]  ;;  %v572_v6 = vld [vmem:[%s2937_s4 + $0xaa8] sm:$0xff] }
  0x8f   : > { %v698_v58 = vld [vmem:[%s2937_s4 + $0xe98] sm:$0xff]  ;;  %v2053_v62 = vpack.c.bf16 %v714_v57, %v682_v56  ;;  %v492_v56 = vld [vmem:[%s2937_s4 + $0x828] sm:$0xff] }
  0x90   : > { %2020 = vmatpush1.bf16.xpose.msra.mxu1 %v2019_v24  ;;  %v2039_v24 = vpack.c.bf16 %v457_v17, %v425_v16  ;;  %v730_v59 = vld [vmem:[%s2937_s4 + $0xf98] sm:$0xff]  ;;  %v300_v16 = vld [vmem:[%s2937_s4 + $0x228] sm:$0xff] }
  0x91   : > { %2022 = vmatprep.subr.bf16.mxu1 %v2021_v26  ;;  %v2041_v26 = vpack.c.bf16 %v522_v21, %v490_v20  ;;  %v2309_v63 = vpack.c.bf16 %v730_v59, %v698_v58  ;;  %v332_v17 = vld [vmem:[%s2937_s4 + $0x328] sm:$0xff]  ;;  %v201_v20 = vld [vmem:[#allocation2 + $0x10] sm:$0xff] }
  0x92   : > { %2276 = vmatpush1.bf16.xpose.msra.mxu0 %v2275_v25  ;;  %v2295_v25 = vpack.c.bf16 %v473_v19, %v441_v18  ;;  %v316_v18 = vld [vmem:[%s2937_s4 + $0x2a8] sm:$0xff] }
  0x93   : > { %2278 = vmatprep.subr.bf16.mxu0 %v2277_v27  ;;  %v2297_v27 = vpack.c.bf16 %v538_v23, %v506_v22  ;;  %v348_v19 = vld [vmem:[%s2937_s4 + $0x3a8] sm:$0xff]  ;;  %v217_v22 = vld [vmem:[#allocation2 + $0x90] sm:$0xff] }
  0x94   : > { %v524_v57 = vld [vmem:[%s2937_s4 + $0x928] sm:$0xff] }
  0x95   : > { %v508_v58 = vld [vmem:[%s2937_s4 + $0x8a8] sm:$0xff] }
  0x96   : > { %v540_v59 = vld [vmem:[%s2937_s4 + $0x9a8] sm:$0xff] }
  0x97   : > { %v604_v7 = vld [vmem:[%s2937_s4 + $0xba8] sm:$0xff] }
  0x98   : > { %2024 = vmatpush1.bf16.xpose.msra.mxu1 %v2023_v36  ;;  %v2043_v36 = vpack.c.bf16 %v521_v29, %v489_v28  ;;  %v299_v28 = vld [vmem:[%s2937_s4 + $0x220] sm:$0xff] }
  0x99   : > { %2026 = vmatprep.subr.bf16.mxu1 %v2025_v38  ;;  %v2045_v38 = vpack.c.bf16 %v586_v33, %v554_v32  ;;  %v331_v29 = vld [vmem:[%s2937_s4 + $0x320] sm:$0xff]  ;;  %v364_v32 = vld [vmem:[%s2937_s4 + $0x428] sm:$0xff] }
  0x9a   : > { %2280 = vmatpush1.bf16.xpose.msra.mxu0 %v2279_v37  ;;  %v2299_v37 = vpack.c.bf16 %v537_v31, %v505_v30  ;;  %v315_v30 = vld [vmem:[%s2937_s4 + $0x2a0] sm:$0xff]  ;;  %v396_v33 = vld [vmem:[%s2937_s4 + $0x528] sm:$0xff] }
  0x9b   : > { %2282 = vmatprep.subr.bf16.mxu0 %v2281_v39  ;;  %v2301_v39 = vpack.c.bf16 %v602_v35, %v570_v34  ;;  %v347_v31 = vld [vmem:[%s2937_s4 + $0x3a0] sm:$0xff]  ;;  %v380_v34 = vld [vmem:[%s2937_s4 + $0x4a8] sm:$0xff] }
  0x9c   : > { %v412_v35 = vld [vmem:[%s2937_s4 + $0x5a8] sm:$0xff] }
  0x9f   : > { %808 = vmatmul.mubr.f32.vlgmr.msra.gmra.mrb[0].mxu1 %v199_v48  ;;  %v2047_v48 = vpack.c.bf16 %v585_v41, %v553_v40  ;;  %v363_v40 = vld [vmem:[%s2937_s4 + $0x420] sm:$0xff] }
  0xa0   : > { %2028 = vmatpush1.bf16.xpose.msra.mxu1 %v2027_v49  ;;  %877 = vmatprep.mubr.f32.mxu1 %v202_v54  ;;  %v2303_v49 = vpack.c.bf16 %v601_v43, %v569_v42  ;;  %v633_v54 = vld [vmem:[%s2937_s4 + $0xc90] sm:$0xff]  ;;  %v395_v41 = vld [vmem:[%s2937_s4 + $0x520] sm:$0xff] }
  0xa1   : > { %1368 = vmatmul.mubr.f32.vlgmr.msra.gmra.mrb[0].mxu0 %v215_v50  ;;  %2030 = vmatprep.subr.bf16.mxu1 %v2029_v52  ;;  %v2049_v50 = vpack.c.bf16 %v650_v45, %v618_v44  ;;  %v617_v52 = vld [vmem:[%s2937_s4 + $0xc10] sm:$0xff]  ;;  %v379_v42 = vld [vmem:[%s2937_s4 + $0x4a0] sm:$0xff]  ;;  %v428_v44 = vld [vmem:[%s2937_s4 + $0x628] sm:$0xff] }
  0xa2   : > { %2284 = vmatpush1.bf16.xpose.msra.mxu0 %v2283_v51  ;;  %1437 = vmatprep.mubr.f32.mxu0 %v218_v55  ;;  %v2305_v51 = vpack.c.bf16 %v666_v47, %v634_v46  ;;  %v665_v55 = vld [vmem:[%s2937_s4 + $0xd90] sm:$0xff]  ;;  %v411_v43 = vld [vmem:[%s2937_s4 + $0x5a0] sm:$0xff]  ;;  %v460_v45 = vld [vmem:[%s2937_s4 + $0x728] sm:$0xff] }
  0xa3   : > { %2286 = vmatprep.subr.bf16.mxu0 %v2285_v53  ;;  %v649_v53 = vld [vmem:[%s2937_s4 + $0xd10] sm:$0xff]  ;;  %v2307_v61 = vpack.c.bf16 %v665_v55, %v633_v54  ;;  %v444_v46 = vld [vmem:[%s2937_s4 + $0x6a8] sm:$0xff]  ;;  %v443_v54 = vld [vmem:[%s2937_s4 + $0x6a0] sm:$0xff] }
  0xa4   : > { %v2051_v60 = vpack.c.bf16 %v649_v53, %v617_v52  ;;  %v476_v47 = vld [vmem:[%s2937_s4 + $0x7a8] sm:$0xff]  ;;  %v427_v52 = vld [vmem:[%s2937_s4 + $0x620] sm:$0xff] }
  0xa5   : > { %v459_v53 = vld [vmem:[%s2937_s4 + $0x720] sm:$0xff] }
  0xa6   : > { %v475_v55 = vld [vmem:[%s2937_s4 + $0x7a0] sm:$0xff] }
  0xa8   : > { %2032 = vmatpush1.bf16.xpose.msra.mxu1 %v2031_v0  ;;  %v681_v0 = vld [vmem:[%s2937_s4 + $0xe10] sm:$0xff] }
  0xa9   : > { %2034 = vmatprep.subr.bf16.mxu1 %v2033_v2  ;;  %v697_v2 = vld [vmem:[%s2937_s4 + $0xe90] sm:$0xff] }
  0xaa   : > { %2288 = vmatpush1.bf16.xpose.msra.mxu0 %v2287_v1  ;;  %v713_v1 = vld [vmem:[%s2937_s4 + $0xf10] sm:$0xff] }
  0xab   : > { %2290 = vmatprep.subr.bf16.mxu0 %v2289_v3  ;;  %v729_v3 = vld [vmem:[%s2937_s4 + $0xf90] sm:$0xff]  ;;  %v2055_v8 = vpack.c.bf16 %v713_v1, %v681_v0  ;;  %v491_v0 = vld [vmem:[%s2937_s4 + $0x820] sm:$0xff] }
  0xac   : > { %v2311_v9 = vpack.c.bf16 %v729_v3, %v697_v2  ;;  %v523_v1 = vld [vmem:[%s2937_s4 + $0x920] sm:$0xff] }
  0xad   : > { %v507_v2 = vld [vmem:[%s2937_s4 + $0x8a0] sm:$0xff] }
  0xae   : > { %v539_v3 = vld [vmem:[%s2937_s4 + $0x9a0] sm:$0xff] }
  0xb0   : > { %2036 = vmatpush1.bf16.xpose.msra.mxu1 %v2035_v12  ;;  %v235_v12 = vld [vmem:[%s2937_s4 + $0x20] sm:$0xff] }
  0xb1   : > { %2038 = vmatprep.subr.bf16.mxu1 %v2037_v14  ;;  %v251_v14 = vld [vmem:[%s2937_s4 + $0xa0] sm:$0xff] }
  0xb2   : > { %2292 = vmatpush1.bf16.xpose.msra.mxu0 %v2291_v13  ;;  %v267_v13 = vld [vmem:[%s2937_s4 + $0x120] sm:$0xff] }
  0xb3   : > { %2294 = vmatprep.subr.bf16.mxu0 %v2293_v15  ;;  %v283_v15 = vld [vmem:[%s2937_s4 + $0x1a0] sm:$0xff]  ;;  %v2059_v21 = vpack.c.bf16 %v267_v13, %v235_v12 }
  0xb4   : > { %v2315_v23 = vpack.c.bf16 %v283_v15, %v251_v14  ;;  %v555_v12 = vld [vmem:[%s2937_s4 + $0xa20] sm:$0xff] }
  0xb5   : > { %v587_v13 = vld [vmem:[%s2937_s4 + $0xb20] sm:$0xff] }
  0xb6   : > { %v571_v14 = vld [vmem:[%s2937_s4 + $0xaa0] sm:$0xff] }
  0xb7   : > { %v603_v15 = vld [vmem:[%s2937_s4 + $0xba0] sm:$0xff] }
  0xb8   : > { %2040 = vmatpush1.bf16.xpose.msra.mxu1 %v2039_v24  ;;  %v2061_v24 = vpack.c.bf16 %v332_v17, %v300_v16  ;;  %v620_v16 = vld [vmem:[%s2937_s4 + $0xc28] sm:$0xff] }
  0xb9   : > { %2042 = vmatprep.subr.bf16.mxu1 %v2041_v26  ;;  %v204_v26 = vld [vmem:[#allocation2 + $0x28] sm:$0xff] }
  0xba   : > { %2296 = vmatpush1.bf16.xpose.msra.mxu0 %v2295_v25  ;;  %v2317_v25 = vpack.c.bf16 %v348_v19, %v316_v18  ;;  %v652_v17 = vld [vmem:[%s2937_s4 + $0xd28] sm:$0xff] }
  0xbb   : > { %2298 = vmatprep.subr.bf16.mxu0 %v2297_v27  ;;  %v220_v27 = vld [vmem:[#allocation2 + $0xa8] sm:$0xff] }
  0xbc   : > { %v636_v18 = vld [vmem:[%s2937_s4 + $0xca8] sm:$0xff] }
  0xbd   : > { %v668_v19 = vld [vmem:[%s2937_s4 + $0xda8] sm:$0xff] }
  0xc0   : > { %2044 = vmatpush1.bf16.xpose.msra.mxu1 %v2043_v36  ;;  %v2063_v36 = vpack.c.bf16 %v331_v29, %v299_v28  ;;  %v684_v28 = vld [vmem:[%s2937_s4 + $0xe28] sm:$0xff] }
  0xc1   : > { %2046 = vmatprep.subr.bf16.mxu1 %v2045_v38  ;;  %v2065_v38 = vpack.c.bf16 %v396_v33, %v364_v32  ;;  %v716_v29 = vld [vmem:[%s2937_s4 + $0xf28] sm:$0xff] }
  0xc2   : > { %2300 = vmatpush1.bf16.xpose.msra.mxu0 %v2299_v37  ;;  %v2319_v37 = vpack.c.bf16 %v347_v31, %v315_v30  ;;  %v700_v30 = vld [vmem:[%s2937_s4 + $0xea8] sm:$0xff] }
  0xc3   : > { %2302 = vmatprep.subr.bf16.mxu0 %v2301_v39  ;;  %v2321_v39 = vpack.c.bf16 %v412_v35, %v380_v34  ;;  %v732_v31 = vld [vmem:[%s2937_s4 + $0xfa8] sm:$0xff]  ;;  %v2085_v34 = vpack.c.bf16 %v716_v29, %v684_v28  ;;  %v494_v28 = vld [vmem:[%s2937_s4 + $0x838] sm:$0xff] }
  0xc4   : > { %v2341_v35 = vpack.c.bf16 %v732_v31, %v700_v30  ;;  %v526_v29 = vld [vmem:[%s2937_s4 + $0x938] sm:$0xff] }
  0xc5   : > { %v510_v30 = vld [vmem:[%s2937_s4 + $0x8b8] sm:$0xff] }
  0xc6   : > { %v542_v31 = vld [vmem:[%s2937_s4 + $0x9b8] sm:$0xff] }
  0xc8   : > { %2048 = vmatpush1.bf16.xpose.msra.mxu1 %v2047_v48  ;;  %v2067_v48 = vpack.c.bf16 %v395_v41, %v363_v40  ;;  %v238_v40 = vld [vmem:[%s2937_s4 + $0x38] sm:$0xff] }
  0xc9   : > { %2050 = vmatprep.subr.bf16.mxu1 %v2049_v50  ;;  %v2069_v50 = vpack.c.bf16 %v460_v45, %v428_v44  ;;  %v270_v41 = vld [vmem:[%s2937_s4 + $0x138] sm:$0xff] }
  0xca   : > { %2304 = vmatpush1.bf16.xpose.msra.mxu0 %v2303_v49  ;;  %v2323_v49 = vpack.c.bf16 %v411_v43, %v379_v42  ;;  %v254_v42 = vld [vmem:[%s2937_s4 + $0xb8] sm:$0xff] }
  0xcb   : > { %2306 = vmatprep.subr.bf16.mxu0 %v2305_v51  ;;  %v2325_v51 = vpack.c.bf16 %v476_v47, %v444_v46  ;;  %v286_v43 = vld [vmem:[%s2937_s4 + $0x1b8] sm:$0xff]  ;;  %v2089_v46 = vpack.c.bf16 %v270_v41, %v238_v40 }
  0xcc   : > { %v2345_v47 = vpack.c.bf16 %v286_v43, %v254_v42  ;;  %v558_v40 = vld [vmem:[%s2937_s4 + $0xa38] sm:$0xff] }
  0xcd   : > { %v590_v41 = vld [vmem:[%s2937_s4 + $0xb38] sm:$0xff] }
  0xce   : > { %v574_v42 = vld [vmem:[%s2937_s4 + $0xab8] sm:$0xff] }
  0xcf   : > { %v606_v43 = vld [vmem:[%s2937_s4 + $0xbb8] sm:$0xff] }
  0xd0   : > { %2052 = vmatpush1.bf16.xpose.msra.mxu1 %v2051_v60  ;;  %v2071_v60 = vpack.c.bf16 %v459_v53, %v427_v52  ;;  %v302_v52 = vld [vmem:[%s2937_s4 + $0x238] sm:$0xff] }
  0xd1   : > { %2054 = vmatprep.subr.bf16.mxu1 %v2053_v62  ;;  %v2073_v62 = vpack.c.bf16 %v524_v57, %v492_v56  ;;  %v334_v53 = vld [vmem:[%s2937_s4 + $0x338] sm:$0xff]  ;;  %v203_v56 = vld [vmem:[#allocation2 + $0x20] sm:$0xff] }
  0xd2   : > { %2308 = vmatpush1.bf16.xpose.msra.mxu0 %v2307_v61  ;;  %v2327_v61 = vpack.c.bf16 %v475_v55, %v443_v54  ;;  %v318_v54 = vld [vmem:[%s2937_s4 + $0x2b8] sm:$0xff] }
  0xd3   : > { %2310 = vmatprep.subr.bf16.mxu0 %v2309_v63  ;;  %v2329_v63 = vpack.c.bf16 %v540_v59, %v508_v58  ;;  %v350_v55 = vld [vmem:[%s2937_s4 + $0x3b8] sm:$0xff]  ;;  %v219_v58 = vld [vmem:[#allocation2 + $0xa0] sm:$0xff] }
  0xd8   : > { %2056 = vmatpush1.bf16.xpose.msra.mxu1 %v2055_v8  ;;  %v2075_v8 = vpack.c.bf16 %v523_v1, %v491_v0  ;;  %v301_v0 = vld [vmem:[%s2937_s4 + $0x230] sm:$0xff] }
  0xd9   : > { %2058 = vmatprep.subr.bf16.mxu1 %v2057_v10  ;;  %v2077_v10 = vpack.c.bf16 %v588_v5, %v556_v4  ;;  %v333_v1 = vld [vmem:[%s2937_s4 + $0x330] sm:$0xff]  ;;  %v366_v4 = vld [vmem:[%s2937_s4 + $0x438] sm:$0xff] }
  0xda   : > { %2312 = vmatpush1.bf16.xpose.msra.mxu0 %v2311_v9  ;;  %v2331_v9 = vpack.c.bf16 %v539_v3, %v507_v2  ;;  %v317_v2 = vld [vmem:[%s2937_s4 + $0x2b0] sm:$0xff]  ;;  %v398_v5 = vld [vmem:[%s2937_s4 + $0x538] sm:$0xff] }
  0xdb   : > { %2314 = vmatprep.subr.bf16.mxu0 %v2313_v11  ;;  %v2333_v11 = vpack.c.bf16 %v604_v7, %v572_v6  ;;  %v349_v3 = vld [vmem:[%s2937_s4 + $0x3b0] sm:$0xff]  ;;  %v382_v6 = vld [vmem:[%s2937_s4 + $0x4b8] sm:$0xff] }
  0xdc   : > { %v414_v7 = vld [vmem:[%s2937_s4 + $0x5b8] sm:$0xff] }
  0xdf   : > { %878 = vmatmul.mubr.f32.vlgmr.msra.gmra.mrb[0].mxu1 %v201_v20  ;;  %v2079_v20 = vpack.c.bf16 %v587_v13, %v555_v12  ;;  %v365_v12 = vld [vmem:[%s2937_s4 + $0x430] sm:$0xff] }
  0xe0   : > { %2060 = vmatpush1.bf16.xpose.msra.mxu1 %v2059_v21  ;;  %947 = vmatprep.mubr.f32.mxu1 %v204_v26  ;;  %v2335_v21 = vpack.c.bf16 %v603_v15, %v571_v14  ;;  %v635_v26 = vld [vmem:[%s2937_s4 + $0xca0] sm:$0xff]  ;;  %v397_v13 = vld [vmem:[%s2937_s4 + $0x530] sm:$0xff] }
  0xe1   : > { %1438 = vmatmul.mubr.f32.vlgmr.msra.gmra.mrb[0].mxu0 %v217_v22  ;;  %2062 = vmatprep.subr.bf16.mxu1 %v2061_v24  ;;  %v2081_v22 = vpack.c.bf16 %v652_v17, %v620_v16  ;;  %v619_v24 = vld [vmem:[%s2937_s4 + $0xc20] sm:$0xff]  ;;  %v381_v14 = vld [vmem:[%s2937_s4 + $0x4b0] sm:$0xff]  ;;  %v430_v16 = vld [vmem:[%s2937_s4 + $0x638] sm:$0xff] }
  0xe2   : > { %2316 = vmatpush1.bf16.xpose.msra.mxu0 %v2315_v23  ;;  %1507 = vmatprep.mubr.f32.mxu0 %v220_v27  ;;  %v2337_v23 = vpack.c.bf16 %v668_v19, %v636_v18  ;;  %v667_v27 = vld [vmem:[%s2937_s4 + $0xda0] sm:$0xff]  ;;  %v413_v15 = vld [vmem:[%s2937_s4 + $0x5b0] sm:$0xff]  ;;  %v462_v17 = vld [vmem:[%s2937_s4 + $0x738] sm:$0xff] }
  0xe3   : > { %2318 = vmatprep.subr.bf16.mxu0 %v2317_v25  ;;  %v651_v25 = vld [vmem:[%s2937_s4 + $0xd20] sm:$0xff]  ;;  %v2339_v33 = vpack.c.bf16 %v667_v27, %v635_v26  ;;  %v446_v18 = vld [vmem:[%s2937_s4 + $0x6b8] sm:$0xff]  ;;  %v445_v26 = vld [vmem:[%s2937_s4 + $0x6b0] sm:$0xff] }
  0xe4   : > { %v2083_v32 = vpack.c.bf16 %v651_v25, %v619_v24  ;;  %v478_v19 = vld [vmem:[%s2937_s4 + $0x7b8] sm:$0xff]  ;;  %v429_v24 = vld [vmem:[%s2937_s4 + $0x630] sm:$0xff] }
  0xe5   : > { %v461_v25 = vld [vmem:[%s2937_s4 + $0x730] sm:$0xff] }
  0xe6   : > { %v477_v27 = vld [vmem:[%s2937_s4 + $0x7b0] sm:$0xff] }
  0xe8   : > { %2064 = vmatpush1.bf16.xpose.msra.mxu1 %v2063_v36  ;;  %v683_v36 = vld [vmem:[%s2937_s4 + $0xe20] sm:$0xff] }
  0xe9   : > { %2066 = vmatprep.subr.bf16.mxu1 %v2065_v38  ;;  %v699_v38 = vld [vmem:[%s2937_s4 + $0xea0] sm:$0xff] }
  0xea   : > { %2320 = vmatpush1.bf16.xpose.msra.mxu0 %v2319_v37  ;;  %v715_v37 = vld [vmem:[%s2937_s4 + $0xf20] sm:$0xff] }
  0xeb   : > { %2322 = vmatprep.subr.bf16.mxu0 %v2321_v39  ;;  %v731_v39 = vld [vmem:[%s2937_s4 + $0xfa0] sm:$0xff]  ;;  %v2087_v44 = vpack.c.bf16 %v715_v37, %v683_v36  ;;  %v493_v36 = vld [vmem:[%s2937_s4 + $0x830] sm:$0xff] }
  0xec   : > { %v2343_v45 = vpack.c.bf16 %v731_v39, %v699_v38  ;;  %v525_v37 = vld [vmem:[%s2937_s4 + $0x930] sm:$0xff] }
  0xed   : > { %v509_v38 = vld [vmem:[%s2937_s4 + $0x8b0] sm:$0xff] }
  0xee   : > { %v541_v39 = vld [vmem:[%s2937_s4 + $0x9b0] sm:$0xff] }
  0xf0   : > { %2068 = vmatpush1.bf16.xpose.msra.mxu1 %v2067_v48  ;;  %v237_v48 = vld [vmem:[%s2937_s4 + $0x30] sm:$0xff] }
  0xf1   : > { %2070 = vmatprep.subr.bf16.mxu1 %v2069_v50  ;;  %v253_v50 = vld [vmem:[%s2937_s4 + $0xb0] sm:$0xff] }
  0xf2   : > { %2324 = vmatpush1.bf16.xpose.msra.mxu0 %v2323_v49  ;;  %v269_v49 = vld [vmem:[%s2937_s4 + $0x130] sm:$0xff] }
  0xf3   : > { %2326 = vmatprep.subr.bf16.mxu0 %v2325_v51  ;;  %v285_v51 = vld [vmem:[%s2937_s4 + $0x1b0] sm:$0xff]  ;;  %v2091_v57 = vpack.c.bf16 %v269_v49, %v237_v48 }
  0xf4   : > { %v2347_v59 = vpack.c.bf16 %v285_v51, %v253_v50  ;;  %v557_v48 = vld [vmem:[%s2937_s4 + $0xa30] sm:$0xff] }
  0xf5   : > { %v589_v49 = vld [vmem:[%s2937_s4 + $0xb30] sm:$0xff] }
  0xf6   : > { %v573_v50 = vld [vmem:[%s2937_s4 + $0xab0] sm:$0xff] }
  0xf7   : > { %v605_v51 = vld [vmem:[%s2937_s4 + $0xbb0] sm:$0xff] }
  0xf8   : > { %2072 = vmatpush1.bf16.xpose.msra.mxu1 %v2071_v60  ;;  %v2093_v60 = vpack.c.bf16 %v334_v53, %v302_v52  ;;  %v622_v52 = vld [vmem:[%s2937_s4 + $0xc38] sm:$0xff] }
  0xf9   : > { %2074 = vmatprep.subr.bf16.mxu1 %v2073_v62  ;;  %v206_v62 = vld [vmem:[#allocation2 + $0x38] sm:$0xff] }
  0xfa   : > { %2328 = vmatpush1.bf16.xpose.msra.mxu0 %v2327_v61  ;;  %v2349_v61 = vpack.c.bf16 %v350_v55, %v318_v54  ;;  %v654_v53 = vld [vmem:[%s2937_s4 + $0xd38] sm:$0xff] }
  0xfb   : > { %2330 = vmatprep.subr.bf16.mxu0 %v2329_v63  ;;  %v222_v63 = vld [vmem:[#allocation2 + $0xb8] sm:$0xff] }
  0xfc   : > { %v638_v54 = vld [vmem:[%s2937_s4 + $0xcb8] sm:$0xff] }
  0xfd   : > { %v670_v55 = vld [vmem:[%s2937_s4 + $0xdb8] sm:$0xff] }
 0x100   : > { %2076 = vmatpush1.bf16.xpose.msra.mxu1 %v2075_v8  ;;  %v2095_v8 = vpack.c.bf16 %v333_v1, %v301_v0  ;;  %v686_v0 = vld [vmem:[%s2937_s4 + $0xe38] sm:$0xff] }
 0x101   : > { %2078 = vmatprep.subr.bf16.mxu1 %v2077_v10  ;;  %v2097_v10 = vpack.c.bf16 %v398_v5, %v366_v4  ;;  %v718_v1 = vld [vmem:[%s2937_s4 + $0xf38] sm:$0xff] }
 0x102   : > { %2332 = vmatpush1.bf16.xpose.msra.mxu0 %v2331_v9  ;;  %v2351_v9 = vpack.c.bf16 %v349_v3, %v317_v2  ;;  %v702_v2 = vld [vmem:[%s2937_s4 + $0xeb8] sm:$0xff] }
 0x103   : > { %2334 = vmatprep.subr.bf16.mxu0 %v2333_v11  ;;  %v2353_v11 = vpack.c.bf16 %v414_v7, %v382_v6  ;;  %v734_v3 = vld [vmem:[%s2937_s4 + $0xfb8] sm:$0xff]  ;;  %v2117_v6 = vpack.c.bf16 %v718_v1, %v686_v0  ;;  %v496_v0 = vld [vmem:[%s2937_s4 + $0x848] sm:$0xff] }
 0x104   : > { %v2373_v7 = vpack.c.bf16 %v734_v3, %v702_v2  ;;  %v528_v1 = vld [vmem:[%s2937_s4 + $0x948] sm:$0xff] }
 0x105   : > { %v512_v2 = vld [vmem:[%s2937_s4 + $0x8c8] sm:$0xff] }
 0x106   : > { %v544_v3 = vld [vmem:[%s2937_s4 + $0x9c8] sm:$0xff] }
 0x108   : > { %2080 = vmatpush1.bf16.xpose.msra.mxu1 %v2079_v20  ;;  %v2099_v20 = vpack.c.bf16 %v397_v13, %v365_v12  ;;  %v240_v12 = vld [vmem:[%s2937_s4 + $0x48] sm:$0xff] }
 0x109   : > { %2082 = vmatprep.subr.bf16.mxu1 %v2081_v22  ;;  %v2101_v22 = vpack.c.bf16 %v462_v17, %v430_v16  ;;  %v272_v13 = vld [vmem:[%s2937_s4 + $0x148] sm:$0xff] }
 0x10a   : > { %2336 = vmatpush1.bf16.xpose.msra.mxu0 %v2335_v21  ;;  %v2355_v21 = vpack.c.bf16 %v413_v15, %v381_v14  ;;  %v256_v14 = vld [vmem:[%s2937_s4 + $0xc8] sm:$0xff] }
 0x10b   : > { %2338 = vmatprep.subr.bf16.mxu0 %v2337_v23  ;;  %v2357_v23 = vpack.c.bf16 %v478_v19, %v446_v18  ;;  %v288_v15 = vld [vmem:[%s2937_s4 + $0x1c8] sm:$0xff]  ;;  %v2121_v18 = vpack.c.bf16 %v272_v13, %v240_v12 }
 0x10c   : > { %v2377_v19 = vpack.c.bf16 %v288_v15, %v256_v14  ;;  %v560_v12 = vld [vmem:[%s2937_s4 + $0xa48] sm:$0xff] }
 0x10d   : > { %v592_v13 = vld [vmem:[%s2937_s4 + $0xb48] sm:$0xff] }
 0x10e   : > { %v576_v14 = vld [vmem:[%s2937_s4 + $0xac8] sm:$0xff] }
 0x10f   : > { %v608_v15 = vld [vmem:[%s2937_s4 + $0xbc8] sm:$0xff] }
 0x110   : > { %2084 = vmatpush1.bf16.xpose.msra.mxu1 %v2083_v32  ;;  %v2103_v32 = vpack.c.bf16 %v461_v25, %v429_v24  ;;  %v304_v24 = vld [vmem:[%s2937_s4 + $0x248] sm:$0xff] }
 0x111   : > { %2086 = vmatprep.subr.bf16.mxu1 %v2085_v34  ;;  %v2105_v34 = vpack.c.bf16 %v526_v29, %v494_v28  ;;  %v336_v25 = vld [vmem:[%s2937_s4 + $0x348] sm:$0xff]  ;;  %v205_v28 = vld [vmem:[#allocation2 + $0x30] sm:$0xff] }
 0x112   : > { %2340 = vmatpush1.bf16.xpose.msra.mxu0 %v2339_v33  ;;  %v2359_v33 = vpack.c.bf16 %v477_v27, %v445_v26  ;;  %v320_v26 = vld [vmem:[%s2937_s4 + $0x2c8] sm:$0xff] }
 0x113   : > { %2342 = vmatprep.subr.bf16.mxu0 %v2341_v35  ;;  %v2361_v35 = vpack.c.bf16 %v542_v31, %v510_v30  ;;  %v352_v27 = vld [vmem:[%s2937_s4 + $0x3c8] sm:$0xff]  ;;  %v221_v30 = vld [vmem:[#allocation2 + $0xb0] sm:$0xff] }
 0x118   : > { %2088 = vmatpush1.bf16.xpose.msra.mxu1 %v2087_v44  ;;  %v2107_v44 = vpack.c.bf16 %v525_v37, %v493_v36  ;;  %v303_v36 = vld [vmem:[%s2937_s4 + $0x240] sm:$0xff] }
 0x119   : > { %2090 = vmatprep.subr.bf16.mxu1 %v2089_v46  ;;  %v2109_v46 = vpack.c.bf16 %v590_v41, %v558_v40  ;;  %v335_v37 = vld [vmem:[%s2937_s4 + $0x340] sm:$0xff]  ;;  %v368_v40 = vld [vmem:[%s2937_s4 + $0x448] sm:$0xff] }
 0x11a   : > { %2344 = vmatpush1.bf16.xpose.msra.mxu0 %v2343_v45  ;;  %v2363_v45 = vpack.c.bf16 %v541_v39, %v509_v38  ;;  %v319_v38 = vld [vmem:[%s2937_s4 + $0x2c0] sm:$0xff]  ;;  %v400_v41 = vld [vmem:[%s2937_s4 + $0x548] sm:$0xff] }
 0x11b   : > { %2346 = vmatprep.subr.bf16.mxu0 %v2345_v47  ;;  %v2365_v47 = vpack.c.bf16 %v606_v43, %v574_v42  ;;  %v351_v39 = vld [vmem:[%s2937_s4 + $0x3c0] sm:$0xff]  ;;  %v384_v42 = vld [vmem:[%s2937_s4 + $0x4c8] sm:$0xff] }
 0x11c   : > { %v416_v43 = vld [vmem:[%s2937_s4 + $0x5c8] sm:$0xff] }
 0x11f   : > { %948 = vmatmul.mubr.f32.vlgmr.msra.gmra.mrb[0].mxu1 %v203_v56  ;;  %v2111_v56 = vpack.c.bf16 %v589_v49, %v557_v48  ;;  %v367_v48 = vld [vmem:[%s2937_s4 + $0x440] sm:$0xff] }
 0x120   : > { %2092 = vmatpush1.bf16.xpose.msra.mxu1 %v2091_v57  ;;  %1017 = vmatprep.mubr.f32.mxu1 %v206_v62  ;;  %v2367_v57 = vpack.c.bf16 %v605_v51, %v573_v50  ;;  %v637_v62 = vld [vmem:[%s2937_s4 + $0xcb0] sm:$0xff]  ;;  %v399_v49 = vld [vmem:[%s2937_s4 + $0x540] sm:$0xff] }
 0x121   : > { %1508 = vmatmul.mubr.f32.vlgmr.msra.gmra.mrb[0].mxu0 %v219_v58  ;;  %2094 = vmatprep.subr.bf16.mxu1 %v2093_v60  ;;  %v2113_v58 = vpack.c.bf16 %v654_v53, %v622_v52  ;;  %v621_v60 = vld [vmem:[%s2937_s4 + $0xc30] sm:$0xff]  ;;  %v383_v50 = vld [vmem:[%s2937_s4 + $0x4c0] sm:$0xff]  ;;  %v432_v52 = vld [vmem:[%s2937_s4 + $0x648] sm:$0xff] }
 0x122   : > { %2348 = vmatpush1.bf16.xpose.msra.mxu0 %v2347_v59  ;;  %1577 = vmatprep.mubr.f32.mxu0 %v222_v63  ;;  %v2369_v59 = vpack.c.bf16 %v670_v55, %v638_v54  ;;  %v669_v63 = vld [vmem:[%s2937_s4 + $0xdb0] sm:$0xff]  ;;  %v415_v51 = vld [vmem:[%s2937_s4 + $0x5c0] sm:$0xff]  ;;  %v464_v53 = vld [vmem:[%s2937_s4 + $0x748] sm:$0xff] }
 0x123   : > { %2350 = vmatprep.subr.bf16.mxu0 %v2349_v61  ;;  %v653_v61 = vld [vmem:[%s2937_s4 + $0xd30] sm:$0xff]  ;;  %v2371_v5 = vpack.c.bf16 %v669_v63, %v637_v62  ;;  %v448_v54 = vld [vmem:[%s2937_s4 + $0x6c8] sm:$0xff]  ;;  %v447_v62 = vld [vmem:[%s2937_s4 + $0x6c0] sm:$0xff] }
 0x124   : > { %v2115_v4 = vpack.c.bf16 %v653_v61, %v621_v60  ;;  %v480_v55 = vld [vmem:[%s2937_s4 + $0x7c8] sm:$0xff]  ;;  %v431_v60 = vld [vmem:[%s2937_s4 + $0x640] sm:$0xff] }
 0x125   : > { %v463_v61 = vld [vmem:[%s2937_s4 + $0x740] sm:$0xff] }
 0x126   : > { %v479_v63 = vld [vmem:[%s2937_s4 + $0x7c0] sm:$0xff] }
 0x128   : > { %2096 = vmatpush1.bf16.xpose.msra.mxu1 %v2095_v8  ;;  %v685_v8 = vld [vmem:[%s2937_s4 + $0xe30] sm:$0xff] }
 0x129   : > { %2098 = vmatprep.subr.bf16.mxu1 %v2097_v10  ;;  %v701_v10 = vld [vmem:[%s2937_s4 + $0xeb0] sm:$0xff] }
 0x12a   : > { %2352 = vmatpush1.bf16.xpose.msra.mxu0 %v2351_v9  ;;  %v717_v9 = vld [vmem:[%s2937_s4 + $0xf30] sm:$0xff] }
 0x12b   : > { %2354 = vmatprep.subr.bf16.mxu0 %v2353_v11  ;;  %v733_v11 = vld [vmem:[%s2937_s4 + $0xfb0] sm:$0xff]  ;;  %v2119_v16 = vpack.c.bf16 %v717_v9, %v685_v8  ;;  %v495_v8 = vld [vmem:[%s2937_s4 + $0x840] sm:$0xff] }
 0x12c   : > { %v2375_v17 = vpack.c.bf16 %v733_v11, %v701_v10  ;;  %v527_v9 = vld [vmem:[%s2937_s4 + $0x940] sm:$0xff] }
 0x12d   : > { %v511_v10 = vld [vmem:[%s2937_s4 + $0x8c0] sm:$0xff] }
 0x12e   : > { %v543_v11 = vld [vmem:[%s2937_s4 + $0x9c0] sm:$0xff] }
 0x130   : > { %2100 = vmatpush1.bf16.xpose.msra.mxu1 %v2099_v20  ;;  %v239_v20 = vld [vmem:[%s2937_s4 + $0x40] sm:$0xff] }
 0x131   : > { %2102 = vmatprep.subr.bf16.mxu1 %v2101_v22  ;;  %v255_v22 = vld [vmem:[%s2937_s4 + $0xc0] sm:$0xff] }
 0x132   : > { %2356 = vmatpush1.bf16.xpose.msra.mxu0 %v2355_v21  ;;  %v271_v21 = vld [vmem:[%s2937_s4 + $0x140] sm:$0xff] }
 0x133   : > { %2358 = vmatprep.subr.bf16.mxu0 %v2357_v23  ;;  %v287_v23 = vld [vmem:[%s2937_s4 + $0x1c0] sm:$0xff]  ;;  %v2123_v29 = vpack.c.bf16 %v271_v21, %v239_v20 }
 0x134   : > { %v2379_v31 = vpack.c.bf16 %v287_v23, %v255_v22  ;;  %v559_v20 = vld [vmem:[%s2937_s4 + $0xa40] sm:$0xff] }
 0x135   : > { %v591_v21 = vld [vmem:[%s2937_s4 + $0xb40] sm:$0xff] }
 0x136   : > { %v575_v22 = vld [vmem:[%s2937_s4 + $0xac0] sm:$0xff] }
 0x137   : > { %v607_v23 = vld [vmem:[%s2937_s4 + $0xbc0] sm:$0xff] }
 0x138   : > { %2104 = vmatpush1.bf16.xpose.msra.mxu1 %v2103_v32  ;;  %v2125_v32 = vpack.c.bf16 %v336_v25, %v304_v24  ;;  %v624_v24 = vld [vmem:[%s2937_s4 + $0xc48] sm:$0xff] }
 0x139   : > { %2106 = vmatprep.subr.bf16.mxu1 %v2105_v34  ;;  %v208_v34 = vld [vmem:[#allocation2 + $0x48] sm:$0xff] }
 0x13a   : > { %2360 = vmatpush1.bf16.xpose.msra.mxu0 %v2359_v33  ;;  %v2381_v33 = vpack.c.bf16 %v352_v27, %v320_v26  ;;  %v656_v25 = vld [vmem:[%s2937_s4 + $0xd48] sm:$0xff] }
 0x13b   : > { %2362 = vmatprep.subr.bf16.mxu0 %v2361_v35  ;;  %v224_v35 = vld [vmem:[#allocation2 + $0xc8] sm:$0xff] }
 0x13c   : > { %v640_v26 = vld [vmem:[%s2937_s4 + $0xcc8] sm:$0xff] }
 0x13d   : > { %v672_v27 = vld [vmem:[%s2937_s4 + $0xdc8] sm:$0xff] }
 0x140   : > { %2108 = vmatpush1.bf16.xpose.msra.mxu1 %v2107_v44  ;;  %v2127_v44 = vpack.c.bf16 %v335_v37, %v303_v36  ;;  %v688_v36 = vld [vmem:[%s2937_s4 + $0xe48] sm:$0xff] }
 0x141   : > { %2110 = vmatprep.subr.bf16.mxu1 %v2109_v46  ;;  %v2129_v46 = vpack.c.bf16 %v400_v41, %v368_v40  ;;  %v720_v37 = vld [vmem:[%s2937_s4 + $0xf48] sm:$0xff] }
 0x142   : > { %2364 = vmatpush1.bf16.xpose.msra.mxu0 %v2363_v45  ;;  %v2383_v45 = vpack.c.bf16 %v351_v39, %v319_v38  ;;  %v704_v38 = vld [vmem:[%s2937_s4 + $0xec8] sm:$0xff] }
 0x143   : > { %2366 = vmatprep.subr.bf16.mxu0 %v2365_v47  ;;  %v2385_v47 = vpack.c.bf16 %v416_v43, %v384_v42  ;;  %v736_v39 = vld [vmem:[%s2937_s4 + $0xfc8] sm:$0xff]  ;;  %v2149_v42 = vpack.c.bf16 %v720_v37, %v688_v36  ;;  %v498_v36 = vld [vmem:[%s2937_s4 + $0x858] sm:$0xff] }
 0x144   : > { %v2405_v43 = vpack.c.bf16 %v736_v39, %v704_v38  ;;  %v530_v37 = vld [vmem:[%s2937_s4 + $0x958] sm:$0xff] }
 0x145   : > { %v514_v38 = vld [vmem:[%s2937_s4 + $0x8d8] sm:$0xff] }
 0x146   : > { %v546_v39 = vld [vmem:[%s2937_s4 + $0x9d8] sm:$0xff] }
 0x148   : > { %2112 = vmatpush1.bf16.xpose.msra.mxu1 %v2111_v56  ;;  %v2131_v56 = vpack.c.bf16 %v399_v49, %v367_v48  ;;  %v242_v48 = vld [vmem:[%s2937_s4 + $0x58] sm:$0xff] }
 0x149   : > { %2114 = vmatprep.subr.bf16.mxu1 %v2113_v58  ;;  %v2133_v58 = vpack.c.bf16 %v464_v53, %v432_v52  ;;  %v274_v49 = vld [vmem:[%s2937_s4 + $0x158] sm:$0xff] }
 0x14a   : > { %2368 = vmatpush1.bf16.xpose.msra.mxu0 %v2367_v57  ;;  %v2387_v57 = vpack.c.bf16 %v415_v51, %v383_v50  ;;  %v258_v50 = vld [vmem:[%s2937_s4 + $0xd8] sm:$0xff] }
 0x14b   : > { %2370 = vmatprep.subr.bf16.mxu0 %v2369_v59  ;;  %v2389_v59 = vpack.c.bf16 %v480_v55, %v448_v54  ;;  %v290_v51 = vld [vmem:[%s2937_s4 + $0x1d8] sm:$0xff]  ;;  %v2153_v54 = vpack.c.bf16 %v274_v49, %v242_v48 }
 0x14c   : > { %v2409_v55 = vpack.c.bf16 %v290_v51, %v258_v50  ;;  %v562_v48 = vld [vmem:[%s2937_s4 + $0xa58] sm:$0xff] }
 0x14d   : > { %v594_v49 = vld [vmem:[%s2937_s4 + $0xb58] sm:$0xff] }
 0x14e   : > { %v578_v50 = vld [vmem:[%s2937_s4 + $0xad8] sm:$0xff] }
 0x14f   : > { %v610_v51 = vld [vmem:[%s2937_s4 + $0xbd8] sm:$0xff] }
 0x150   : > { %2116 = vmatpush1.bf16.xpose.msra.mxu1 %v2115_v4  ;;  %v2135_v4 = vpack.c.bf16 %v463_v61, %v431_v60  ;;  %v306_v60 = vld [vmem:[%s2937_s4 + $0x258] sm:$0xff] }
 0x151   : > { %2118 = vmatprep.subr.bf16.mxu1 %v2117_v6  ;;  %v2137_v6 = vpack.c.bf16 %v528_v1, %v496_v0  ;;  %v338_v61 = vld [vmem:[%s2937_s4 + $0x358] sm:$0xff]  ;;  %v207_v0 = vld [vmem:[#allocation2 + $0x40] sm:$0xff] }
 0x152   : > { %2372 = vmatpush1.bf16.xpose.msra.mxu0 %v2371_v5  ;;  %v2391_v5 = vpack.c.bf16 %v479_v63, %v447_v62  ;;  %v322_v62 = vld [vmem:[%s2937_s4 + $0x2d8] sm:$0xff] }
 0x153   : > { %2374 = vmatprep.subr.bf16.mxu0 %v2373_v7  ;;  %v2393_v7 = vpack.c.bf16 %v544_v3, %v512_v2  ;;  %v354_v63 = vld [vmem:[%s2937_s4 + $0x3d8] sm:$0xff]  ;;  %v223_v2 = vld [vmem:[#allocation2 + $0xc0] sm:$0xff] }
 0x158   : > { %2120 = vmatpush1.bf16.xpose.msra.mxu1 %v2119_v16  ;;  %v2139_v16 = vpack.c.bf16 %v527_v9, %v495_v8  ;;  %v305_v8 = vld [vmem:[%s2937_s4 + $0x250] sm:$0xff] }
 0x159   : > { %2122 = vmatprep.subr.bf16.mxu1 %v2121_v18  ;;  %v2141_v18 = vpack.c.bf16 %v592_v13, %v560_v12  ;;  %v337_v9 = vld [vmem:[%s2937_s4 + $0x350] sm:$0xff]  ;;  %v370_v12 = vld [vmem:[%s2937_s4 + $0x458] sm:$0xff] }
 0x15a   : > { %2376 = vmatpush1.bf16.xpose.msra.mxu0 %v2375_v17  ;;  %v2395_v17 = vpack.c.bf16 %v543_v11, %v511_v10  ;;  %v321_v10 = vld [vmem:[%s2937_s4 + $0x2d0] sm:$0xff]  ;;  %v402_v13 = vld [vmem:[%s2937_s4 + $0x558] sm:$0xff] }
 0x15b   : > { %2378 = vmatprep.subr.bf16.mxu0 %v2377_v19  ;;  %v2397_v19 = vpack.c.bf16 %v608_v15, %v576_v14  ;;  %v353_v11 = vld [vmem:[%s2937_s4 + $0x3d0] sm:$0xff]  ;;  %v386_v14 = vld [vmem:[%s2937_s4 + $0x4d8] sm:$0xff] }
 0x15c   : > { %v418_v15 = vld [vmem:[%s2937_s4 + $0x5d8] sm:$0xff] }
 0x15f   : > { %1018 = vmatmul.mubr.f32.vlgmr.msra.gmra.mrb[0].mxu1 %v205_v28  ;;  %v2143_v28 = vpack.c.bf16 %v591_v21, %v559_v20  ;;  %v369_v20 = vld [vmem:[%s2937_s4 + $0x450] sm:$0xff] }
 0x160   : > { %2124 = vmatpush1.bf16.xpose.msra.mxu1 %v2123_v29  ;;  %1087 = vmatprep.mubr.f32.mxu1 %v208_v34  ;;  %v2399_v29 = vpack.c.bf16 %v607_v23, %v575_v22  ;;  %v639_v34 = vld [vmem:[%s2937_s4 + $0xcc0] sm:$0xff]  ;;  %v401_v21 = vld [vmem:[%s2937_s4 + $0x550] sm:$0xff] }
 0x161   : > { %1578 = vmatmul.mubr.f32.vlgmr.msra.gmra.mrb[0].mxu0 %v221_v30  ;;  %2126 = vmatprep.subr.bf16.mxu1 %v2125_v32  ;;  %v2145_v30 = vpack.c.bf16 %v656_v25, %v624_v24  ;;  %v623_v32 = vld [vmem:[%s2937_s4 + $0xc40] sm:$0xff]  ;;  %v385_v22 = vld [vmem:[%s2937_s4 + $0x4d0] sm:$0xff]  ;;  %v434_v24 = vld [vmem:[%s2937_s4 + $0x658] sm:$0xff] }
 0x162   : > { %2380 = vmatpush1.bf16.xpose.msra.mxu0 %v2379_v31  ;;  %1647 = vmatprep.mubr.f32.mxu0 %v224_v35  ;;  %v2401_v31 = vpack.c.bf16 %v672_v27, %v640_v26  ;;  %v671_v35 = vld [vmem:[%s2937_s4 + $0xdc0] sm:$0xff]  ;;  %v417_v23 = vld [vmem:[%s2937_s4 + $0x5d0] sm:$0xff]  ;;  %v466_v25 = vld [vmem:[%s2937_s4 + $0x758] sm:$0xff] }
 0x163   : > { %2382 = vmatprep.subr.bf16.mxu0 %v2381_v33  ;;  %v655_v33 = vld [vmem:[%s2937_s4 + $0xd40] sm:$0xff]  ;;  %v2403_v41 = vpack.c.bf16 %v671_v35, %v639_v34  ;;  %v450_v26 = vld [vmem:[%s2937_s4 + $0x6d8] sm:$0xff]  ;;  %v449_v34 = vld [vmem:[%s2937_s4 + $0x6d0] sm:$0xff] }
 0x164   : > { %v2147_v40 = vpack.c.bf16 %v655_v33, %v623_v32  ;;  %v482_v27 = vld [vmem:[%s2937_s4 + $0x7d8] sm:$0xff]  ;;  %v433_v32 = vld [vmem:[%s2937_s4 + $0x650] sm:$0xff] }
 0x165   : > { %v465_v33 = vld [vmem:[%s2937_s4 + $0x750] sm:$0xff] }
 0x166   : > { %v481_v35 = vld [vmem:[%s2937_s4 + $0x7d0] sm:$0xff] }
 0x168   : > { %2128 = vmatpush1.bf16.xpose.msra.mxu1 %v2127_v44  ;;  %v687_v44 = vld [vmem:[%s2937_s4 + $0xe40] sm:$0xff] }
 0x169   : > { %2130 = vmatprep.subr.bf16.mxu1 %v2129_v46  ;;  %v703_v46 = vld [vmem:[%s2937_s4 + $0xec0] sm:$0xff] }
 0x16a   : > { %2384 = vmatpush1.bf16.xpose.msra.mxu0 %v2383_v45  ;;  %v719_v45 = vld [vmem:[%s2937_s4 + $0xf40] sm:$0xff] }
 0x16b   : > { %2386 = vmatprep.subr.bf16.mxu0 %v2385_v47  ;;  %v735_v47 = vld [vmem:[%s2937_s4 + $0xfc0] sm:$0xff]  ;;  %v2151_v52 = vpack.c.bf16 %v719_v45, %v687_v44  ;;  %v497_v44 = vld [vmem:[%s2937_s4 + $0x850] sm:$0xff] }
 0x16c   : > { %v2407_v53 = vpack.c.bf16 %v735_v47, %v703_v46  ;;  %v529_v45 = vld [vmem:[%s2937_s4 + $0x950] sm:$0xff] }
 0x16d   : > { %v513_v46 = vld [vmem:[%s2937_s4 + $0x8d0] sm:$0xff] }
 0x16e   : > { %v545_v47 = vld [vmem:[%s2937_s4 + $0x9d0] sm:$0xff] }
 0x170   : > { %2132 = vmatpush1.bf16.xpose.msra.mxu1 %v2131_v56  ;;  %v241_v56 = vld [vmem:[%s2937_s4 + $0x50] sm:$0xff] }
 0x171   : > { %2134 = vmatprep.subr.bf16.mxu1 %v2133_v58  ;;  %v257_v58 = vld [vmem:[%s2937_s4 + $0xd0] sm:$0xff] }
 0x172   : > { %2388 = vmatpush1.bf16.xpose.msra.mxu0 %v2387_v57  ;;  %v273_v57 = vld [vmem:[%s2937_s4 + $0x150] sm:$0xff] }
 0x173   : > { %2390 = vmatprep.subr.bf16.mxu0 %v2389_v59  ;;  %v289_v59 = vld [vmem:[%s2937_s4 + $0x1d0] sm:$0xff]  ;;  %v2155_v1 = vpack.c.bf16 %v273_v57, %v241_v56 }
 0x174   : > { %v2411_v3 = vpack.c.bf16 %v289_v59, %v257_v58  ;;  %v561_v56 = vld [vmem:[%s2937_s4 + $0xa50] sm:$0xff] }
 0x175   : > { %v593_v57 = vld [vmem:[%s2937_s4 + $0xb50] sm:$0xff] }
 0x176   : > { %v577_v58 = vld [vmem:[%s2937_s4 + $0xad0] sm:$0xff] }
 0x177   : > { %v609_v59 = vld [vmem:[%s2937_s4 + $0xbd0] sm:$0xff] }
 0x178   : > { %2136 = vmatpush1.bf16.xpose.msra.mxu1 %v2135_v4  ;;  %v2157_v4 = vpack.c.bf16 %v338_v61, %v306_v60  ;;  %v626_v60 = vld [vmem:[%s2937_s4 + $0xc58] sm:$0xff] }
 0x179   : > { %2138 = vmatprep.subr.bf16.mxu1 %v2137_v6  ;;  %v210_v6 = vld [vmem:[#allocation2 + $0x58] sm:$0xff] }
 0x17a   : > { %2392 = vmatpush1.bf16.xpose.msra.mxu0 %v2391_v5  ;;  %v2413_v5 = vpack.c.bf16 %v354_v63, %v322_v62  ;;  %v658_v61 = vld [vmem:[%s2937_s4 + $0xd58] sm:$0xff] }
 0x17b   : > { %2394 = vmatprep.subr.bf16.mxu0 %v2393_v7  ;;  %v226_v7 = vld [vmem:[#allocation2 + $0xd8] sm:$0xff] }
 0x17c   : > { %v642_v62 = vld [vmem:[%s2937_s4 + $0xcd8] sm:$0xff] }
 0x17d   : > { %v674_v63 = vld [vmem:[%s2937_s4 + $0xdd8] sm:$0xff] }
 0x180   : > { %2140 = vmatpush1.bf16.xpose.msra.mxu1 %v2139_v16  ;;  %v2159_v16 = vpack.c.bf16 %v337_v9, %v305_v8  ;;  %v690_v8 = vld [vmem:[%s2937_s4 + $0xe58] sm:$0xff] }
 0x181   : > { %2142 = vmatprep.subr.bf16.mxu1 %v2141_v18  ;;  %v2161_v18 = vpack.c.bf16 %v402_v13, %v370_v12  ;;  %v722_v9 = vld [vmem:[%s2937_s4 + $0xf58] sm:$0xff] }
 0x182   : > { %2396 = vmatpush1.bf16.xpose.msra.mxu0 %v2395_v17  ;;  %v2415_v17 = vpack.c.bf16 %v353_v11, %v321_v10  ;;  %v706_v10 = vld [vmem:[%s2937_s4 + $0xed8] sm:$0xff] }
 0x183   : > { %2398 = vmatprep.subr.bf16.mxu0 %v2397_v19  ;;  %v2417_v19 = vpack.c.bf16 %v418_v15, %v386_v14  ;;  %v738_v11 = vld [vmem:[%s2937_s4 + $0xfd8] sm:$0xff]  ;;  %v2181_v14 = vpack.c.bf16 %v722_v9, %v690_v8  ;;  %v500_v8 = vld [vmem:[%s2937_s4 + $0x868] sm:$0xff] }
 0x184   : > { %v2437_v15 = vpack.c.bf16 %v738_v11, %v706_v10  ;;  %v532_v9 = vld [vmem:[%s2937_s4 + $0x968] sm:$0xff] }
 0x185   : > { %v516_v10 = vld [vmem:[%s2937_s4 + $0x8e8] sm:$0xff] }
 0x186   : > { %v548_v11 = vld [vmem:[%s2937_s4 + $0x9e8] sm:$0xff] }
 0x188   : > { %2144 = vmatpush1.bf16.xpose.msra.mxu1 %v2143_v28  ;;  %v2163_v28 = vpack.c.bf16 %v401_v21, %v369_v20  ;;  %v244_v20 = vld [vmem:[%s2937_s4 + $0x68] sm:$0xff] }
 0x189   : > { %2146 = vmatprep.subr.bf16.mxu1 %v2145_v30  ;;  %v2165_v30 = vpack.c.bf16 %v466_v25, %v434_v24  ;;  %v276_v21 = vld [vmem:[%s2937_s4 + $0x168] sm:$0xff] }
 0x18a   : > { %2400 = vmatpush1.bf16.xpose.msra.mxu0 %v2399_v29  ;;  %v2419_v29 = vpack.c.bf16 %v417_v23, %v385_v22  ;;  %v260_v22 = vld [vmem:[%s2937_s4 + $0xe8] sm:$0xff] }
 0x18b   : > { %2402 = vmatprep.subr.bf16.mxu0 %v2401_v31  ;;  %v2421_v31 = vpack.c.bf16 %v482_v27, %v450_v26  ;;  %v292_v23 = vld [vmem:[%s2937_s4 + $0x1e8] sm:$0xff]  ;;  %v2185_v26 = vpack.c.bf16 %v276_v21, %v244_v20 }
 0x18c   : > { %v2441_v27 = vpack.c.bf16 %v292_v23, %v260_v22  ;;  %v564_v20 = vld [vmem:[%s2937_s4 + $0xa68] sm:$0xff] }
 0x18d   : > { %v596_v21 = vld [vmem:[%s2937_s4 + $0xb68] sm:$0xff] }
 0x18e   : > { %v580_v22 = vld [vmem:[%s2937_s4 + $0xae8] sm:$0xff] }
 0x18f   : > { %v612_v23 = vld [vmem:[%s2937_s4 + $0xbe8] sm:$0xff] }
 0x190   : > { %2148 = vmatpush1.bf16.xpose.msra.mxu1 %v2147_v40  ;;  %v2167_v40 = vpack.c.bf16 %v465_v33, %v433_v32  ;;  %v308_v32 = vld [vmem:[%s2937_s4 + $0x268] sm:$0xff] }
 0x191   : > { %2150 = vmatprep.subr.bf16.mxu1 %v2149_v42  ;;  %v2169_v42 = vpack.c.bf16 %v530_v37, %v498_v36  ;;  %v340_v33 = vld [vmem:[%s2937_s4 + $0x368] sm:$0xff]  ;;  %v209_v36 = vld [vmem:[#allocation2 + $0x50] sm:$0xff] }
 0x192   : > { %2404 = vmatpush1.bf16.xpose.msra.mxu0 %v2403_v41  ;;  %v2423_v41 = vpack.c.bf16 %v481_v35, %v449_v34  ;;  %v324_v34 = vld [vmem:[%s2937_s4 + $0x2e8] sm:$0xff] }
 0x193   : > { %2406 = vmatprep.subr.bf16.mxu0 %v2405_v43  ;;  %v2425_v43 = vpack.c.bf16 %v546_v39, %v514_v38  ;;  %v356_v35 = vld [vmem:[%s2937_s4 + $0x3e8] sm:$0xff]  ;;  %v225_v38 = vld [vmem:[#allocation2 + $0xd0] sm:$0xff] }
 0x198   : > { %2152 = vmatpush1.bf16.xpose.msra.mxu1 %v2151_v52  ;;  %v2171_v52 = vpack.c.bf16 %v529_v45, %v497_v44  ;;  %v307_v44 = vld [vmem:[%s2937_s4 + $0x260] sm:$0xff] }
 0x199   : > { %2154 = vmatprep.subr.bf16.mxu1 %v2153_v54  ;;  %v2173_v54 = vpack.c.bf16 %v594_v49, %v562_v48  ;;  %v339_v45 = vld [vmem:[%s2937_s4 + $0x360] sm:$0xff]  ;;  %v372_v48 = vld [vmem:[%s2937_s4 + $0x468] sm:$0xff] }
 0x19a   : > { %2408 = vmatpush1.bf16.xpose.msra.mxu0 %v2407_v53  ;;  %v2427_v53 = vpack.c.bf16 %v545_v47, %v513_v46  ;;  %v323_v46 = vld [vmem:[%s2937_s4 + $0x2e0] sm:$0xff]  ;;  %v404_v49 = vld [vmem:[%s2937_s4 + $0x568] sm:$0xff] }
 0x19b   : > { %2410 = vmatprep.subr.bf16.mxu0 %v2409_v55  ;;  %v2429_v55 = vpack.c.bf16 %v610_v51, %v578_v50  ;;  %v355_v47 = vld [vmem:[%s2937_s4 + $0x3e0] sm:$0xff]  ;;  %v388_v50 = vld [vmem:[%s2937_s4 + $0x4e8] sm:$0xff] }
 0x19c   : > { %v420_v51 = vld [vmem:[%s2937_s4 + $0x5e8] sm:$0xff] }
 0x19f   : > { %1088 = vmatmul.mubr.f32.vlgmr.msra.gmra.mrb[0].mxu1 %v207_v0  ;;  %v2175_v0 = vpack.c.bf16 %v593_v57, %v561_v56  ;;  %v371_v56 = vld [vmem:[%s2937_s4 + $0x460] sm:$0xff] }
 0x1a0   : > { %2156 = vmatpush1.bf16.xpose.msra.mxu1 %v2155_v1  ;;  %1157 = vmatprep.mubr.f32.mxu1 %v210_v6  ;;  %v2431_v1 = vpack.c.bf16 %v609_v59, %v577_v58  ;;  %v641_v6 = vld [vmem:[%s2937_s4 + $0xcd0] sm:$0xff]  ;;  %v403_v57 = vld [vmem:[%s2937_s4 + $0x560] sm:$0xff] }
 0x1a1   : > { %1648 = vmatmul.mubr.f32.vlgmr.msra.gmra.mrb[0].mxu0 %v223_v2  ;;  %2158 = vmatprep.subr.bf16.mxu1 %v2157_v4  ;;  %v2177_v2 = vpack.c.bf16 %v658_v61, %v626_v60  ;;  %v625_v4 = vld [vmem:[%s2937_s4 + $0xc50] sm:$0xff]  ;;  %v387_v58 = vld [vmem:[%s2937_s4 + $0x4e0] sm:$0xff]  ;;  %v436_v60 = vld [vmem:[%s2937_s4 + $0x668] sm:$0xff] }
 0x1a2   : > { %2412 = vmatpush1.bf16.xpose.msra.mxu0 %v2411_v3  ;;  %1717 = vmatprep.mubr.f32.mxu0 %v226_v7  ;;  %v2433_v3 = vpack.c.bf16 %v674_v63, %v642_v62  ;;  %v673_v7 = vld [vmem:[%s2937_s4 + $0xdd0] sm:$0xff]  ;;  %v419_v59 = vld [vmem:[%s2937_s4 + $0x5e0] sm:$0xff]  ;;  %v468_v61 = vld [vmem:[%s2937_s4 + $0x768] sm:$0xff] }
 0x1a3   : > { %2414 = vmatprep.subr.bf16.mxu0 %v2413_v5  ;;  %v657_v5 = vld [vmem:[%s2937_s4 + $0xd50] sm:$0xff]  ;;  %v2435_v13 = vpack.c.bf16 %v673_v7, %v641_v6  ;;  %v452_v62 = vld [vmem:[%s2937_s4 + $0x6e8] sm:$0xff]  ;;  %v451_v6 = vld [vmem:[%s2937_s4 + $0x6e0] sm:$0xff] }
 0x1a4   : > { %v2179_v12 = vpack.c.bf16 %v657_v5, %v625_v4  ;;  %v484_v63 = vld [vmem:[%s2937_s4 + $0x7e8] sm:$0xff]  ;;  %v435_v4 = vld [vmem:[%s2937_s4 + $0x660] sm:$0xff] }
 0x1a5   : > { %v467_v5 = vld [vmem:[%s2937_s4 + $0x760] sm:$0xff] }
 0x1a6   : > { %v483_v7 = vld [vmem:[%s2937_s4 + $0x7e0] sm:$0xff] }
 0x1a8   : > { %2160 = vmatpush1.bf16.xpose.msra.mxu1 %v2159_v16  ;;  %v689_v16 = vld [vmem:[%s2937_s4 + $0xe50] sm:$0xff] }
 0x1a9   : > { %2162 = vmatprep.subr.bf16.mxu1 %v2161_v18  ;;  %v705_v18 = vld [vmem:[%s2937_s4 + $0xed0] sm:$0xff] }
 0x1aa   : > { %2416 = vmatpush1.bf16.xpose.msra.mxu0 %v2415_v17  ;;  %v721_v17 = vld [vmem:[%s2937_s4 + $0xf50] sm:$0xff] }
 0x1ab   : > { %2418 = vmatprep.subr.bf16.mxu0 %v2417_v19  ;;  %v737_v19 = vld [vmem:[%s2937_s4 + $0xfd0] sm:$0xff]  ;;  %v2183_v24 = vpack.c.bf16 %v721_v17, %v689_v16  ;;  %v499_v16 = vld [vmem:[%s2937_s4 + $0x860] sm:$0xff] }
 0x1ac   : > { %v2439_v25 = vpack.c.bf16 %v737_v19, %v705_v18  ;;  %v531_v17 = vld [vmem:[%s2937_s4 + $0x960] sm:$0xff] }
 0x1ad   : > { %v515_v18 = vld [vmem:[%s2937_s4 + $0x8e0] sm:$0xff] }
 0x1ae   : > { %v547_v19 = vld [vmem:[%s2937_s4 + $0x9e0] sm:$0xff] }
 0x1b0   : > { %2164 = vmatpush1.bf16.xpose.msra.mxu1 %v2163_v28  ;;  %v243_v28 = vld [vmem:[%s2937_s4 + $0x60] sm:$0xff] }
 0x1b1   : > { %2166 = vmatprep.subr.bf16.mxu1 %v2165_v30  ;;  %v259_v30 = vld [vmem:[%s2937_s4 + $0xe0] sm:$0xff] }
 0x1b2   : > { %2420 = vmatpush1.bf16.xpose.msra.mxu0 %v2419_v29  ;;  %v275_v29 = vld [vmem:[%s2937_s4 + $0x160] sm:$0xff] }
 0x1b3   : > { %2422 = vmatprep.subr.bf16.mxu0 %v2421_v31  ;;  %v291_v31 = vld [vmem:[%s2937_s4 + $0x1e0] sm:$0xff]  ;;  %v2187_v37 = vpack.c.bf16 %v275_v29, %v243_v28 }
 0x1b4   : > { %v2443_v39 = vpack.c.bf16 %v291_v31, %v259_v30  ;;  %v563_v28 = vld [vmem:[%s2937_s4 + $0xa60] sm:$0xff] }
 0x1b5   : > { %v595_v29 = vld [vmem:[%s2937_s4 + $0xb60] sm:$0xff] }
 0x1b6   : > { %v579_v30 = vld [vmem:[%s2937_s4 + $0xae0] sm:$0xff] }
 0x1b7   : > { %v611_v31 = vld [vmem:[%s2937_s4 + $0xbe0] sm:$0xff] }
 0x1b8   : > { %2168 = vmatpush1.bf16.xpose.msra.mxu1 %v2167_v40  ;;  %v2189_v40 = vpack.c.bf16 %v340_v33, %v308_v32  ;;  %v628_v32 = vld [vmem:[%s2937_s4 + $0xc68] sm:$0xff] }
 0x1b9   : > { %2170 = vmatprep.subr.bf16.mxu1 %v2169_v42  ;;  %v212_v42 = vld [vmem:[#allocation2 + $0x68] sm:$0xff] }
 0x1ba   : > { %2424 = vmatpush1.bf16.xpose.msra.mxu0 %v2423_v41  ;;  %v2445_v41 = vpack.c.bf16 %v356_v35, %v324_v34  ;;  %v660_v33 = vld [vmem:[%s2937_s4 + $0xd68] sm:$0xff] }
 0x1bb   : > { %2426 = vmatprep.subr.bf16.mxu0 %v2425_v43  ;;  %v228_v43 = vld [vmem:[#allocation2 + $0xe8] sm:$0xff] }
 0x1bc   : > { %v644_v34 = vld [vmem:[%s2937_s4 + $0xce8] sm:$0xff] }
 0x1bd   : > { %v676_v35 = vld [vmem:[%s2937_s4 + $0xde8] sm:$0xff] }
 0x1c0   : > { %2172 = vmatpush1.bf16.xpose.msra.mxu1 %v2171_v52  ;;  %v2191_v52 = vpack.c.bf16 %v339_v45, %v307_v44  ;;  %v692_v44 = vld [vmem:[%s2937_s4 + $0xe68] sm:$0xff] }
 0x1c1   : > { %2174 = vmatprep.subr.bf16.mxu1 %v2173_v54  ;;  %v2193_v54 = vpack.c.bf16 %v404_v49, %v372_v48  ;;  %v724_v45 = vld [vmem:[%s2937_s4 + $0xf68] sm:$0xff] }
 0x1c2   : > { %2428 = vmatpush1.bf16.xpose.msra.mxu0 %v2427_v53  ;;  %v2447_v53 = vpack.c.bf16 %v355_v47, %v323_v46  ;;  %v708_v46 = vld [vmem:[%s2937_s4 + $0xee8] sm:$0xff] }
 0x1c3   : > { %2430 = vmatprep.subr.bf16.mxu0 %v2429_v55  ;;  %v2449_v55 = vpack.c.bf16 %v420_v51, %v388_v50  ;;  %v740_v47 = vld [vmem:[%s2937_s4 + $0xfe8] sm:$0xff]  ;;  %v2213_v50 = vpack.c.bf16 %v724_v45, %v692_v44  ;;  %v502_v44 = vld [vmem:[%s2937_s4 + $0x878] sm:$0xff] }
 0x1c4   : > { %v2469_v51 = vpack.c.bf16 %v740_v47, %v708_v46  ;;  %v534_v45 = vld [vmem:[%s2937_s4 + $0x978] sm:$0xff] }
 0x1c5   : > { %v518_v46 = vld [vmem:[%s2937_s4 + $0x8f8] sm:$0xff] }
 0x1c6   : > { %v550_v47 = vld [vmem:[%s2937_s4 + $0x9f8] sm:$0xff] }
 0x1c8   : > { %2176 = vmatpush1.bf16.xpose.msra.mxu1 %v2175_v0  ;;  %v2195_v0 = vpack.c.bf16 %v403_v57, %v371_v56  ;;  %v246_v56 = vld [vmem:[%s2937_s4 + $0x78] sm:$0xff] }
 0x1c9   : > { %2178 = vmatprep.subr.bf16.mxu1 %v2177_v2  ;;  %v2197_v2 = vpack.c.bf16 %v468_v61, %v436_v60  ;;  %v278_v57 = vld [vmem:[%s2937_s4 + $0x178] sm:$0xff] }
 0x1ca   : > { %2432 = vmatpush1.bf16.xpose.msra.mxu0 %v2431_v1  ;;  %v2451_v1 = vpack.c.bf16 %v419_v59, %v387_v58  ;;  %v262_v58 = vld [vmem:[%s2937_s4 + $0xf8] sm:$0xff] }
 0x1cb   : > { %2434 = vmatprep.subr.bf16.mxu0 %v2433_v3  ;;  %v2453_v3 = vpack.c.bf16 %v484_v63, %v452_v62  ;;  %v294_v59 = vld [vmem:[%s2937_s4 + $0x1f8] sm:$0xff]  ;;  %v2217_v62 = vpack.c.bf16 %v278_v57, %v246_v56 }
 0x1cc   : > { %v2473_v63 = vpack.c.bf16 %v294_v59, %v262_v58  ;;  %v566_v56 = vld [vmem:[%s2937_s4 + $0xa78] sm:$0xff] }
 0x1cd   : > { %v598_v57 = vld [vmem:[%s2937_s4 + $0xb78] sm:$0xff] }
 0x1ce   : > { %v582_v58 = vld [vmem:[%s2937_s4 + $0xaf8] sm:$0xff] }
 0x1cf   : > { %v614_v59 = vld [vmem:[%s2937_s4 + $0xbf8] sm:$0xff] }
 0x1d0   : > { %2180 = vmatpush1.bf16.xpose.msra.mxu1 %v2179_v12  ;;  %v2199_v12 = vpack.c.bf16 %v467_v5, %v435_v4  ;;  %v310_v4 = vld [vmem:[%s2937_s4 + $0x278] sm:$0xff] }
 0x1d1   : > { %2182 = vmatprep.subr.bf16.mxu1 %v2181_v14  ;;  %v2201_v14 = vpack.c.bf16 %v532_v9, %v500_v8  ;;  %v342_v5 = vld [vmem:[%s2937_s4 + $0x378] sm:$0xff]  ;;  %v211_v8 = vld [vmem:[#allocation2 + $0x60] sm:$0xff] }
 0x1d2   : > { %2436 = vmatpush1.bf16.xpose.msra.mxu0 %v2435_v13  ;;  %v2455_v13 = vpack.c.bf16 %v483_v7, %v451_v6  ;;  %v326_v6 = vld [vmem:[%s2937_s4 + $0x2f8] sm:$0xff] }
 0x1d3   : > { %2438 = vmatprep.subr.bf16.mxu0 %v2437_v15  ;;  %v2457_v15 = vpack.c.bf16 %v548_v11, %v516_v10  ;;  %v358_v7 = vld [vmem:[%s2937_s4 + $0x3f8] sm:$0xff]  ;;  %v227_v10 = vld [vmem:[#allocation2 + $0xe0] sm:$0xff] }
 0x1d8   : > { %2184 = vmatpush1.bf16.xpose.msra.mxu1 %v2183_v24  ;;  %v2203_v24 = vpack.c.bf16 %v531_v17, %v499_v16  ;;  %v309_v16 = vld [vmem:[%s2937_s4 + $0x270] sm:$0xff] }
 0x1d9   : > { %2186 = vmatprep.subr.bf16.mxu1 %v2185_v26  ;;  %v2205_v26 = vpack.c.bf16 %v596_v21, %v564_v20  ;;  %v341_v17 = vld [vmem:[%s2937_s4 + $0x370] sm:$0xff]  ;;  %v374_v20 = vld [vmem:[%s2937_s4 + $0x478] sm:$0xff] }
 0x1da   : > { %2440 = vmatpush1.bf16.xpose.msra.mxu0 %v2439_v25  ;;  %v2459_v25 = vpack.c.bf16 %v547_v19, %v515_v18  ;;  %v325_v18 = vld [vmem:[%s2937_s4 + $0x2f0] sm:$0xff]  ;;  %v406_v21 = vld [vmem:[%s2937_s4 + $0x578] sm:$0xff] }
 0x1db   : > { %2442 = vmatprep.subr.bf16.mxu0 %v2441_v27  ;;  %v2461_v27 = vpack.c.bf16 %v612_v23, %v580_v22  ;;  %v357_v19 = vld [vmem:[%s2937_s4 + $0x3f0] sm:$0xff]  ;;  %v390_v22 = vld [vmem:[%s2937_s4 + $0x4f8] sm:$0xff] }
 0x1dc   : > { %v422_v23 = vld [vmem:[%s2937_s4 + $0x5f8] sm:$0xff] }
 0x1df   : > { %1158 = vmatmul.mubr.f32.vlgmr.msra.gmra.mrb[0].mxu1 %v209_v36  ;;  %v2207_v36 = vpack.c.bf16 %v595_v29, %v563_v28  ;;  %v373_v28 = vld [vmem:[%s2937_s4 + $0x470] sm:$0xff] }
 0x1e0   : > { %2188 = vmatpush1.bf16.xpose.msra.mxu1 %v2187_v37  ;;  %1227 = vmatprep.mubr.f32.mxu1 %v212_v42  ;;  %v2463_v37 = vpack.c.bf16 %v611_v31, %v579_v30  ;;  %v643_v42 = vld [vmem:[%s2937_s4 + $0xce0] sm:$0xff]  ;;  %v405_v29 = vld [vmem:[%s2937_s4 + $0x570] sm:$0xff] }
 0x1e1   : > { %1718 = vmatmul.mubr.f32.vlgmr.msra.gmra.mrb[0].mxu0 %v225_v38  ;;  %2190 = vmatprep.subr.bf16.mxu1 %v2189_v40  ;;  %v2209_v38 = vpack.c.bf16 %v660_v33, %v628_v32  ;;  %v627_v40 = vld [vmem:[%s2937_s4 + $0xc60] sm:$0xff]  ;;  %v389_v30 = vld [vmem:[%s2937_s4 + $0x4f0] sm:$0xff]  ;;  %v438_v32 = vld [vmem:[%s2937_s4 + $0x678] sm:$0xff] }
 0x1e2   : > { %2444 = vmatpush1.bf16.xpose.msra.mxu0 %v2443_v39  ;;  %1787 = vmatprep.mubr.f32.mxu0 %v228_v43  ;;  %v2465_v39 = vpack.c.bf16 %v676_v35, %v644_v34  ;;  %v675_v43 = vld [vmem:[%s2937_s4 + $0xde0] sm:$0xff]  ;;  %v421_v31 = vld [vmem:[%s2937_s4 + $0x5f0] sm:$0xff]  ;;  %v470_v33 = vld [vmem:[%s2937_s4 + $0x778] sm:$0xff] }
 0x1e3   : > { %2446 = vmatprep.subr.bf16.mxu0 %v2445_v41  ;;  %v659_v41 = vld [vmem:[%s2937_s4 + $0xd60] sm:$0xff]  ;;  %v2467_v49 = vpack.c.bf16 %v675_v43, %v643_v42  ;;  %v454_v34 = vld [vmem:[%s2937_s4 + $0x6f8] sm:$0xff]  ;;  %v453_v42 = vld [vmem:[%s2937_s4 + $0x6f0] sm:$0xff] }
 0x1e4   : > { %v2211_v48 = vpack.c.bf16 %v659_v41, %v627_v40  ;;  %v486_v35 = vld [vmem:[%s2937_s4 + $0x7f8] sm:$0xff]  ;;  %v437_v40 = vld [vmem:[%s2937_s4 + $0x670] sm:$0xff] }
 0x1e5   : > { %v469_v41 = vld [vmem:[%s2937_s4 + $0x770] sm:$0xff] }
 0x1e6   : > { %v485_v43 = vld [vmem:[%s2937_s4 + $0x7f0] sm:$0xff] }
 0x1e8   : > { %2192 = vmatpush1.bf16.xpose.msra.mxu1 %v2191_v52  ;;  %v691_v52 = vld [vmem:[%s2937_s4 + $0xe60] sm:$0xff] }
 0x1e9   : > { %2194 = vmatprep.subr.bf16.mxu1 %v2193_v54  ;;  %v707_v54 = vld [vmem:[%s2937_s4 + $0xee0] sm:$0xff] }
 0x1ea   : > { %2448 = vmatpush1.bf16.xpose.msra.mxu0 %v2447_v53  ;;  %v723_v53 = vld [vmem:[%s2937_s4 + $0xf60] sm:$0xff] }
 0x1eb   : > { %2450 = vmatprep.subr.bf16.mxu0 %v2449_v55  ;;  %v739_v55 = vld [vmem:[%s2937_s4 + $0xfe0] sm:$0xff]  ;;  %v2215_v60 = vpack.c.bf16 %v723_v53, %v691_v52  ;;  %v501_v52 = vld [vmem:[%s2937_s4 + $0x870] sm:$0xff] }
 0x1ec   : > { %v2471_v61 = vpack.c.bf16 %v739_v55, %v707_v54  ;;  %v533_v53 = vld [vmem:[%s2937_s4 + $0x970] sm:$0xff] }
 0x1ed   : > { %v517_v54 = vld [vmem:[%s2937_s4 + $0x8f0] sm:$0xff] }
 0x1ee   : > { %v549_v55 = vld [vmem:[%s2937_s4 + $0x9f0] sm:$0xff] }
 0x1f0   : > { %2196 = vmatpush1.bf16.xpose.msra.mxu1 %v2195_v0  ;;  %v245_v0 = vld [vmem:[%s2937_s4 + $0x70] sm:$0xff] }
 0x1f1   : > { %2198 = vmatprep.subr.bf16.mxu1 %v2197_v2  ;;  %v261_v2 = vld [vmem:[%s2937_s4 + $0xf0] sm:$0xff] }
 0x1f2   : > { %2452 = vmatpush1.bf16.xpose.msra.mxu0 %v2451_v1  ;;  %v277_v1 = vld [vmem:[%s2937_s4 + $0x170] sm:$0xff] }
 0x1f3   : > { %2454 = vmatprep.subr.bf16.mxu0 %v2453_v3  ;;  %v293_v3 = vld [vmem:[%s2937_s4 + $0x1f0] sm:$0xff]  ;;  %v2219_v9 = vpack.c.bf16 %v277_v1, %v245_v0 }
 0x1f4   : > { %v2475_v11 = vpack.c.bf16 %v293_v3, %v261_v2  ;;  %v565_v0 = vld [vmem:[%s2937_s4 + $0xa70] sm:$0xff] }
 0x1f5   : > { %v597_v1 = vld [vmem:[%s2937_s4 + $0xb70] sm:$0xff] }
 0x1f6   : > { %v581_v2 = vld [vmem:[%s2937_s4 + $0xaf0] sm:$0xff] }
 0x1f7   : > { %v613_v3 = vld [vmem:[%s2937_s4 + $0xbf0] sm:$0xff] }
 0x1f8   : > { %2200 = vmatpush1.bf16.xpose.msra.mxu1 %v2199_v12  ;;  %v2221_v12 = vpack.c.bf16 %v342_v5, %v310_v4  ;;  %v630_v4 = vld [vmem:[%s2937_s4 + $0xc78] sm:$0xff] }
 0x1f9   : > { %2202 = vmatprep.subr.bf16.mxu1 %v2201_v14  ;;  %v214_v14 = vld [vmem:[#allocation2 + $0x78] sm:$0xff] }
 0x1fa   : > { %2456 = vmatpush1.bf16.xpose.msra.mxu0 %v2455_v13  ;;  %v2477_v13 = vpack.c.bf16 %v358_v7, %v326_v6  ;;  %v662_v5 = vld [vmem:[%s2937_s4 + $0xd78] sm:$0xff] }
 0x1fb   : > { %2458 = vmatprep.subr.bf16.mxu0 %v2457_v15  ;;  %v230_v15 = vld [vmem:[#allocation2 + $0xf8] sm:$0xff] }
 0x1fc   : > { %v646_v6 = vld [vmem:[%s2937_s4 + $0xcf8] sm:$0xff] }
 0x1fd   : > { %v678_v7 = vld [vmem:[%s2937_s4 + $0xdf8] sm:$0xff] }
 0x200   : > { %2204 = vmatpush1.bf16.xpose.msra.mxu1 %v2203_v24  ;;  %v2223_v24 = vpack.c.bf16 %v341_v17, %v309_v16  ;;  %v694_v16 = vld [vmem:[%s2937_s4 + $0xe78] sm:$0xff] }
 0x201   : > { %2206 = vmatprep.subr.bf16.mxu1 %v2205_v26  ;;  %v2225_v26 = vpack.c.bf16 %v406_v21, %v374_v20  ;;  %v726_v17 = vld [vmem:[%s2937_s4 + $0xf78] sm:$0xff] }
 0x202   : > { %2460 = vmatpush1.bf16.xpose.msra.mxu0 %v2459_v25  ;;  %v2479_v25 = vpack.c.bf16 %v357_v19, %v325_v18  ;;  %v710_v18 = vld [vmem:[%s2937_s4 + $0xef8] sm:$0xff] }
 0x203   : > { %2462 = vmatprep.subr.bf16.mxu0 %v2461_v27  ;;  %v2481_v27 = vpack.c.bf16 %v422_v23, %v390_v22  ;;  %v742_v19 = vld [vmem:[%s2937_s4 + $0xff8] sm:$0xff]  ;;  %v2245_v22 = vpack.c.bf16 %v726_v17, %v694_v16 }
 0x204   : > { %v2501_v23 = vpack.c.bf16 %v742_v19, %v710_v18 }
 0x208   : > { %2208 = vmatpush1.bf16.xpose.msra.mxu1 %v2207_v36  ;;  %v2227_v36 = vpack.c.bf16 %v405_v29, %v373_v28 }
 0x209   : > { %2210 = vmatprep.subr.bf16.mxu1 %v2209_v38  ;;  %v2229_v38 = vpack.c.bf16 %v470_v33, %v438_v32 }
 0x20a   : > { %2464 = vmatpush1.bf16.xpose.msra.mxu0 %v2463_v37  ;;  %v2483_v37 = vpack.c.bf16 %v421_v31, %v389_v30  ;;  %v213_v30 = vld [vmem:[#allocation2 + $0x70] sm:$0xff] }
 0x20b   : > { %2466 = vmatprep.subr.bf16.mxu0 %v2465_v39  ;;  %v2485_v39 = vpack.c.bf16 %v486_v35, %v454_v34  ;;  %v229_v31 = vld [vmem:[#allocation2 + $0xf0] sm:$0xff] }
 0x210   : > { %2212 = vmatpush1.bf16.xpose.msra.mxu1 %v2211_v48  ;;  %v2231_v48 = vpack.c.bf16 %v469_v41, %v437_v40 }
 0x211   : > { %2214 = vmatprep.subr.bf16.mxu1 %v2213_v50  ;;  %v2233_v50 = vpack.c.bf16 %v534_v45, %v502_v44 }
 0x212   : > { %2468 = vmatpush1.bf16.xpose.msra.mxu0 %v2467_v49  ;;  %v2487_v49 = vpack.c.bf16 %v485_v43, %v453_v42 }
 0x213   : > { %2470 = vmatprep.subr.bf16.mxu0 %v2469_v51  ;;  %v2489_v51 = vpack.c.bf16 %v550_v47, %v518_v46 }
 0x218   : > { %2216 = vmatpush1.bf16.xpose.msra.mxu1 %v2215_v60  ;;  %v2235_v60 = vpack.c.bf16 %v533_v53, %v501_v52 }
 0x219   : > { %2218 = vmatprep.subr.bf16.mxu1 %v2217_v62  ;;  %v2237_v62 = vpack.c.bf16 %v598_v57, %v566_v56 }
 0x21a   : > { %2472 = vmatpush1.bf16.xpose.msra.mxu0 %v2471_v61  ;;  %v2491_v61 = vpack.c.bf16 %v549_v55, %v517_v54 }
 0x21b   : > { %2474 = vmatprep.subr.bf16.mxu0 %v2473_v63  ;;  %v2493_v63 = vpack.c.bf16 %v614_v59, %v582_v58 }
 0x21f   : > { %1228 = vmatmul.mubr.f32.vlgmr.msra.gmra.mrb[0].mxu1 %v211_v8  ;;  %v2239_v8 = vpack.c.bf16 %v597_v1, %v565_v0 }
 0x220   : > { %2220 = vmatpush1.bf16.xpose.msra.mxu1 %v2219_v9  ;;  %1297 = vmatprep.mubr.f32.mxu1 %v214_v14  ;;  %v2495_v9 = vpack.c.bf16 %v613_v3, %v581_v2  ;;  %v645_v14 = vld [vmem:[%s2937_s4 + $0xcf0] sm:$0xff] }
 0x221   : > { %1788 = vmatmul.mubr.f32.vlgmr.msra.gmra.mrb[0].mxu0 %v227_v10  ;;  %2222 = vmatprep.subr.bf16.mxu1 %v2221_v12  ;;  %v2241_v10 = vpack.c.bf16 %v662_v5, %v630_v4  ;;  %v629_v12 = vld [vmem:[%s2937_s4 + $0xc70] sm:$0xff] }
 0x222   : > { %2476 = vmatpush1.bf16.xpose.msra.mxu0 %v2475_v11  ;;  %1857 = vmatprep.mubr.f32.mxu0 %v230_v15  ;;  %v2497_v11 = vpack.c.bf16 %v678_v7, %v646_v6  ;;  %v677_v15 = vld [vmem:[%s2937_s4 + $0xdf0] sm:$0xff] }
 0x223   : > { %2478 = vmatprep.subr.bf16.mxu0 %v2477_v13  ;;  %v661_v13 = vld [vmem:[%s2937_s4 + $0xd70] sm:$0xff]  ;;  %v2499_v21 = vpack.c.bf16 %v677_v15, %v645_v14 }
 0x224   : > { %v2243_v20 = vpack.c.bf16 %v661_v13, %v629_v12 }
 0x228   : > { %2224 = vmatpush1.bf16.xpose.msra.mxu1 %v2223_v24  ;;  %v693_v24 = vld [vmem:[%s2937_s4 + $0xe70] sm:$0xff] }
 0x229   : > { %2226 = vmatprep.subr.bf16.mxu1 %v2225_v26  ;;  %v709_v26 = vld [vmem:[%s2937_s4 + $0xef0] sm:$0xff] }
 0x22a   : > { %2480 = vmatpush1.bf16.xpose.msra.mxu0 %v2479_v25  ;;  %v725_v25 = vld [vmem:[%s2937_s4 + $0xf70] sm:$0xff] }
 0x22b   : > { %2482 = vmatprep.subr.bf16.mxu0 %v2481_v27  ;;  %v741_v27 = vld [vmem:[%s2937_s4 + $0xff0] sm:$0xff]  ;;  %v2247_v28 = vpack.c.bf16 %v725_v25, %v693_v24 }
 0x22c   : > { %v2503_v29 = vpack.c.bf16 %v741_v27, %v709_v26 }
 0x230   : > { %2228 = vmatpush1.bf16.xpose.msra.mxu1 %v2227_v36 }
 0x231   : > { %2230 = vmatprep.subr.bf16.mxu1 %v2229_v38 }
 0x232   : > { %2484 = vmatpush1.bf16.xpose.msra.mxu0 %v2483_v37 }
 0x233   : > { %2486 = vmatprep.subr.bf16.mxu0 %v2485_v39 }
 0x238   : > { %2232 = vmatpush1.bf16.xpose.msra.mxu1 %v2231_v48 }
 0x239   : > { %2234 = vmatprep.subr.bf16.mxu1 %v2233_v50 }
 0x23a   : > { %2488 = vmatpush1.bf16.xpose.msra.mxu0 %v2487_v49 }
 0x23b   : > { %2490 = vmatprep.subr.bf16.mxu0 %v2489_v51 }
 0x240   : > { %2236 = vmatpush1.bf16.xpose.msra.mxu1 %v2235_v60 }
 0x241   : > { %2238 = vmatprep.subr.bf16.mxu1 %v2237_v62 }
 0x242   : > { %2492 = vmatpush1.bf16.xpose.msra.mxu0 %v2491_v61 }
 0x243   : > { %2494 = vmatprep.subr.bf16.mxu0 %v2493_v63 }
 0x248   : > { %2240 = vmatpush1.bf16.xpose.msra.mxu1 %v2239_v8 }
 0x249   : > { %2242 = vmatprep.subr.bf16.mxu1 %v2241_v10 }
 0x24a   : > { %2496 = vmatpush1.bf16.xpose.msra.mxu0 %v2495_v9 }
 0x24b   : > { %2498 = vmatprep.subr.bf16.mxu0 %v2497_v11 }
 0x250   : > { %2244 = vmatpush1.bf16.xpose.msra.mxu1 %v2243_v20 }
 0x251   : > { %2246 = vmatprep.subr.bf16.mxu1 %v2245_v22 }
 0x252   : > { %2500 = vmatpush1.bf16.xpose.msra.mxu0 %v2499_v21 }
 0x253   : > { %2502 = vmatprep.subr.bf16.mxu0 %v2501_v23 }
 0x258   : > { %2248 = vmatpush1.bf16.xpose.msra.mxu1 %v2247_v28 }
 0x25a   : > { %2504 = vmatpush1.bf16.xpose.msra.mxu0 %v2503_v29 }
 0x25f   : > { %1298 = vmatmul.mubr.f32.vlgmr.msra.gmra.mrb[0].mxu1 %v213_v30 }
 0x261   : > { %1858 = vmatmul.mubr.f32.vlgmr.msra.gmra.mrb[0].mxu0 %v229_v31 }
 0x332   : > { %v1299_v32 = vpop.f32.mrb[0].mxu1 }
 0x333   : > { %v1301_v34 = vpop.f32.mrb[1].mxu1 }
 0x334   : > { %v1859_v33 = vpop.f32.mrb[0].mxu0 }
 0x335   : > { %v2505_v35 = vadd.f32 %v1859_v33, %v1299_v32  ;;  %v1861_v36 = vpop.f32.mrb[1].mxu0 }
 0x337   : > { %1863 = vst [vmem:[%s197_s23] sm:$0xff] %v2505_v35 }
 0x338   : > { %2680 = shalt.err (!%p2677_p7)
}
 0x339   : > { %s2681_s6 = scalar_lea.hbm %s3460_s29, 128  ;;  %s2685_s19 = scalar_lea.hbm %s3511_s2, 256 }
 0x33a   : > { %p2682_p13 = scmp.ne.s32.totalorder %s3460_s29, %s2681_s6  ;;  %p2686_p12 = scmp.lt.u32.totalorder %s3460_s29, %s3511_s2 }
 0x33b   : > { %p2687_p4 = scmp.lt.u32.totalorder %s2685_s19, %s2681_s6  ;;  %p2689_p5 = scmp.lt.u32.totalorder %s2681_s6, %s3460_s29 }
 0x33c   : > { %p2683_p2 = pnand %p2682_p13, %p3532_p10 }
 0x33d   : > { %p2688_p8 = por %p2687_p4, %p2686_p12 }
 0x33e   : > { %p2684_p6 = pneg %p2683_p2 }
 0x33f   : > { %p2690_p11 = por %p2689_p5, %p2688_p8 }
 0x341   : > { %p2691_p1 = pnand %p2690_p11, %p2684_p6 }
 0x343   : > { %2694 = shalt.err (!%p2691_p1)
}
 0x344   : > { %2540 = dma.vmem_to_hbm [thread:$0]  (%p3532_p10), %s3462_s26, 128, %s3460_s29, %s1865_s5  }
 0x345 PF: > { %s1892_s4 = sand.u32 1, %s2733_s9   ;;  %p3533_p0 = scmp.ne.s32.totalorder %s3522_s22, 0 }
 0x346   : > { %p3534_p9 = scmp.ge.s32.totalorder %s2753_s14, 2  ;;  %s1893_s18 = scalar_lea.sflag [#allocation4], %s1892_s4 }
 0x348   : > { %p2551_p3 = pnand %p3534_p9, %p3533_p0 }
 0x34a   : > { %2728 = dma.done.wait (!%p2551_p3), %s1893_s18, 128  }
 0x34b   : > { %2730 = vsyncadd (!%p2551_p3), %s1893_s18, 4294967168  ;;  %s19_s14 = sadd.s32 1, %s2753_s14   ;;  %s3535_s9 = smov %s2737_s10 }
 0x34c   : > { %p16_p7 = scmp.ge.s32.totalorder %s19_s14, 4   ;;  %s3536_s10 = smov %s2741_s11 }
 0x34d   : > { %s3537_s11 = smov %s2894_s25  ;;  %s3538_s12 = smov %s2749_s13 }
 0x34e   : > { %s3539_s13 = smov %s3541_s28  ;;  %18 = sbr.rel (!%p16_p7) target bundleno = 7 (0x7), region = 79 }
 0x355   :  { %1898 = vsyncpa [#allocation3], 1 }
 0x356   :  { %1900 = vsyncpa [#allocation3 + $0x1], 1 }
 0x357   :  { %1901 = vsyncpa [#allocation6], 1 }
 0x358   :  { %1903 = vsyncpa [#allocation6 + $0x1], 1 }
 0x359   :  { %1904 = vsyncpa [#allocation4], 1 }
 0x35a   :  { %1906 = vsyncpa [#allocation4 + $0x1], 1 }

</bundles_post_ra>
